<compile_context>
chip_gen: v6e
topology: v6e:2x2x1
jax: 0.10.0
libtpu: 0.0.40
codegen_flags: <defaults>
</compile_context>

<pallas_src>
import jax
import jax.numpy as jnp
import numpy as np
from jax.experimental import pallas as pl
from jax.experimental.pallas import tpu as pltpu


# ---------------------------------------------------------------------------
# Bilinear interpolation matrix (align_corners=True, as in the module spec)
# ---------------------------------------------------------------------------
def interp_matrix(n_in, n_out):
    if n_in == 1:
        return jnp.ones((n_out, 1), jnp.float32)
    src = jnp.arange(n_out, dtype=jnp.float32) * (n_in - 1) / (n_out - 1)
    lo = jnp.clip(jnp.floor(src).astype(jnp.int32), 0, n_in - 2)
    frac = src - lo.astype(jnp.float32)
    rows = jnp.arange(n_out)
    A = jnp.zeros((n_out, n_in), jnp.float32)
    A = A.at[rows, lo].add(1.0 - frac)
    A = A.at[rows, lo + 1].add(frac)
    return A


# ---------------------------------------------------------------------------
# Fused Up.forward: one grid-less pallas_call (batch folded onto lanes)
# ---------------------------------------------------------------------------
def up_forward_impl(x1_nchw, x2_nchw, params):
    N, C1, Hin, Win = x1_nchw.shape
    _, C2, H, W = x2_nchw.shape
    Hup, Wup = 2 * Hin, 2 * Win
    dY, dX = H - Hup, W - Wup
    py0, px0 = dY // 2, dX // 2                      # F.pad offsets (diff // 2)
    Cin = C1 + C2
    Cout = params["w1"].shape[-1]
    Sin, S = Hin * Win, H * W
    NS = N * S
    f32, bf16 = jnp.float32, jnp.bfloat16
    taps = [(dy, dx) for dy in range(3) for dx in range(3)]

    # --- upsample + F.pad folded into one operator (zero rows = pad ring) ---
    Ah = jnp.zeros((H, Hin), f32).at[py0:py0 + Hup, :].set(interp_matrix(Hin, Hup))
    Aw = jnp.zeros((W, Win), f32).at[px0:px0 + Wup, :].set(interp_matrix(Win, Wup))
    upT = jnp.kron(Ah, Aw).T.astype(bf16)            # (Sin, S)  u = x1 @ upT

    # --- per-tap validity masks on the batch-folded flat spatial axis -------
    pos = jnp.arange(NS)
    hh, ww = (pos // W) % H, pos % W
    masks = jnp.stack([((hh + dy - 1 >= 0) & (hh + dy - 1 < H) &
                        (ww + dx - 1 >= 0) & (ww + dx - 1 < W)).astype(f32)
                       for dy, dx in taps])          # (9, NS)

    # --- conv weights pre-transposed for channels-first dots ----------------
    # row block k of w*t is w[dy,dx].T, i.e. (Cout, Cin_of_that_conv)
    w1t = jnp.transpose(params["w1"], (0, 1, 3, 2)).reshape(9 * Cout, Cin).astype(bf16)
    w2t = jnp.transpose(params["w2"], (0, 1, 3, 2)).reshape(9 * Cout, Cout).astype(bf16)
    s1 = params["scale1"].reshape(Cout, 1).astype(f32)
    b1 = params["shift1"].reshape(Cout, 1).astype(f32)
    s2 = params["scale2"].reshape(Cout, 1).astype(f32)
    b2 = params["shift2"].reshape(Cout, 1).astype(f32)

    # Inputs stay NCHW; only free reshapes at the boundary (no transposes).
    x1_nc = x1_nchw.reshape(N * C1, Sin).astype(f32)
    x2f = x2_nchw.reshape(N, C2, S).astype(f32)

    def kernel(x1_ref, x2_ref, upT_ref, m_ref, w1_ref, s1_ref, b1_ref,
               w2_ref, s2_ref, b2_ref, o_ref, x_ref):
        # ---- bilinear 2x upsample + pad: one MXU matmul, lane-dense result --
        u = jnp.dot(x1_ref[...].astype(bf16), upT_ref[...],
                    preferred_element_type=f32)                  # (N*C1, S)

        # ---- cat([x2, up(x1)], dim=1), channels-first, batch on lanes -------
        for b in range(N):                                       # lane-dense slab stores
            x_ref[0:C2, b * S:(b + 1) * S] = x2_ref[b]
            x_ref[C2:Cin, b * S:(b + 1) * S] = u[b * C1:(b + 1) * C1, :]

        masks = m_ref[...]                                       # (9, NS) f32

        def conv3x3(xv, wv, cout):
            # 9 accumulating channels-first dots; taps via XLU roll + border
            # mask applied after the dot (no im2col, no relayout copies).
            acc = jnp.zeros((cout, NS), f32)
            for k, (dy, dx) in enumerate(taps):
                off = (dy - 1) * W + (dx - 1)
                rolled = xv if off == 0 else pltpu.roll(xv, shift=(-off) % NS, axis=1)
                wk = wv[k * cout:(k + 1) * cout, :]              # (cout, cin)
                contrib = jnp.dot(wk, rolled.astype(bf16),
                                  preferred_element_type=f32)    # (cout, NS)
                if (dy, dx) != (1, 1):                           # center tap: all-valid
                    contrib = contrib * masks[k:k + 1, :]
                acc = acc + contrib
            return acc

        # ---- conv1 + BN + ReLU (f32 epilogue) -------------------------------
        y1 = conv3x3(x_ref[...], w1_ref[...], Cout)
        y1 = jnp.maximum(y1 * s1_ref[...] + b1_ref[...], 0.0)

        # ---- conv2 + BN + ReLU ----------------------------------------------
        y2 = conv3x3(y1, w2_ref[...], Cout)
        y2 = jnp.maximum(y2 * s2_ref[...] + b2_ref[...], 0.0)

        # ---- lane-dense NCHW-flat store (no wrapper transpose) --------------
        for b in range(N):
            o_ref[b] = y2[:, b * S:(b + 1) * S]

    vspec = pl.BlockSpec(memory_space=pltpu.MemorySpace.VMEM)
    out = pl.pallas_call(
        kernel,
        out_shape=jax.ShapeDtypeStruct((N, Cout, S), f32),
        in_specs=[vspec] * 10,
        out_specs=vspec,
        scratch_shapes=[pltpu.VMEM((Cin, NS), f32)],   # concat activation
    )(x1_nc, x2f, upT, masks, w1t, s1, b1, w2t, s2, b2)

    # (N, Cout, H*W) is already NCHW-flat -> free reshape.
    return out.reshape(N, Cout, H, W)


up_forward = jax.jit(up_forward_impl)


# ---------------------------------------------------------------------------
# Parameter construction (deterministic, synthetic)
# ---------------------------------------------------------------------------
def init_up_params(key, in_channels, out_channels, eps=1e-5):
    """DoubleConv(in, out): Conv3x3 -> BN -> ReLU -> Conv3x3 -> BN -> ReLU."""
    ks = jax.random.split(key, 2)

    def conv_bn(k, cin, cout):
        kw, kb, kg, kbt, km, kv = jax.random.split(k, 6)
        w = 0.1 * jax.random.normal(kw, (3, 3, cin, cout), jnp.float32)  # HWIO
        b = 0.1 * jax.random.normal(kb, (cout,), jnp.float32)
        gamma = 1.0 + 0.1 * jax.random.normal(kg, (cout,), jnp.float32)
        beta = 0.1 * jax.random.normal(kbt, (cout,), jnp.float32)
        mean = 0.05 * jax.random.normal(km, (cout,), jnp.float32)
        var = jax.random.uniform(kv, (cout,), jnp.float32, 0.5, 1.5)
        # TODO(synk): BatchNorm is applied with running stats (eval mode);
        # training-mode batch statistics are not reproduced.
        scale = gamma / jnp.sqrt(var + eps)
        shift = beta + (b - mean) * scale
        return w, scale, shift

    w1, s1, h1 = conv_bn(ks[0], in_channels, out_channels)
    w2, s2, h2 = conv_bn(ks[1], out_channels, out_channels)
    return dict(w1=w1, scale1=s1, shift1=h1, w2=w2, scale2=s2, shift2=h2)


# ---------------------------------------------------------------------------
# Pure-JAX f32 reference (correctness check only)
# ---------------------------------------------------------------------------
def up_forward_reference(x1_nchw, x2_nchw, params):
    N, C1, Hin, Win = x1_nchw.shape
    Ah = interp_matrix(Hin, 2 * Hin)
    Aw = interp_matrix(Win, 2 * Win)
    x1u = jnp.einsum("oh,nchw->ncow", Ah, x1_nchw)
    x1u = jnp.einsum("pw,ncow->ncop", Aw, x1u)
    dY = x2_nchw.shape[2] - x1u.shape[2]
    dX = x2_nchw.shape[3] - x1u.shape[3]
    x1u = jnp.pad(x1u, ((0, 0), (0, 0),
                        (dY // 2, dY - dY // 2), (dX // 2, dX - dX // 2)))
    x = jnp.concatenate([x2_nchw, x1u], axis=1)

    def cbr(x, w, scale, shift):
        y = jax.lax.conv_general_dilated(
            x, w, window_strides=(1, 1), padding="SAME",
            dimension_numbers=("NCHW", "HWIO", "NCHW"))
        y = y * scale[None, :, None, None] + shift[None, :, None, None]
        return jnp.maximum(y, 0.0)

    y = cbr(x, params["w1"], params["scale1"], params["shift1"])
    y = cbr(y, params["w2"], params["scale2"], params["shift2"])
    return y


if __name__ == "__main__":
    key = jax.random.PRNGKey(0)
    k1, k2, kp = jax.random.split(key, 3)

    in_channels, out_channels = 8, 4
    N = 2
    # x1: low-res features (in_channels // 2 channels), x2: skip connection.
    x1 = jax.random.normal(k1, (N, in_channels // 2, 8, 8), jnp.float32)
    x2 = jax.random.normal(k2, (N, in_channels // 2, 16, 16), jnp.float32)
    params = init_up_params(kp, in_channels, out_channels)

    out = jax.block_until_ready(up_forward(x1, x2, params))
    ref = jax.block_until_ready(up_forward_reference(x1, x2, params))

    assert out.shape == (N, out_channels, 16, 16), out.shape
    np.testing.assert_allclose(np.asarray(out), np.asarray(ref),
                               rtol=5e-2, atol=5e-2)
    print("KERNEL_OK")
</pallas_src>

<mosaic_0001>
module attributes {stable_mosaic.version = 11 : i64} {
  func.func private @main(%arg0: i32) attributes {dimension_semantics = [#tpu.dimension_semantics<core_parallel>], iteration_bounds = array<i64: 2>, tpu.core_type = #tpu.core_type<sc_scalar_subcore>, window_params = []} {
    return
  }
}

module attributes {stable_mosaic.version = 11 : i64} {
  func.func private @main(%arg0: i32) attributes {dimension_semantics = [#tpu.dimension_semantics<core_parallel>], iteration_bounds = array<i64: 2>, tpu.core_type = #tpu.core_type<sc_scalar_subcore>, window_params = []} {
    return
  }
}

module attributes {stable_mosaic.version = 11 : i64} {
  func.func @kernel(%arg0: memref<8x64xf32, #tpu.memory_space<vmem>>, %arg1: memref<2x4x256xf32, #tpu.memory_space<vmem>>, %arg2: memref<64x256xbf16, #tpu.memory_space<vmem>>, %arg3: memref<9x512xf32, #tpu.memory_space<vmem>>, %arg4: memref<36x8xbf16, #tpu.memory_space<vmem>>, %arg5: memref<4x1xf32, #tpu.memory_space<vmem>>, %arg6: memref<4x1xf32, #tpu.memory_space<vmem>>, %arg7: memref<36x4xbf16, #tpu.memory_space<vmem>>, %arg8: memref<4x1xf32, #tpu.memory_space<vmem>>, %arg9: memref<4x1xf32, #tpu.memory_space<vmem>>, %arg10: memref<2x4x256xf32, #tpu.memory_space<vmem>>, %arg11: memref<8x512xf32, #tpu.memory_space<vmem>>) attributes {dimension_semantics = [], scalar_prefetch = 0 : i64, scratch_operands = 1 : i64, tpu.core_type = #tpu.core_type<tc>} {
    %c0 = arith.constant 0 : index
    %c0_0 = arith.constant 0 : index
    %0 = vector.load %arg0[%c0, %c0_0] : memref<8x64xf32, #tpu.memory_space<vmem>>, vector<8x64xf32>
    %1 = arith.truncf %0 : vector<8x64xf32> to vector<8x64xbf16>
    %c0_1 = arith.constant 0 : index
    %c0_2 = arith.constant 0 : index
    %2 = vector.load %arg2[%c0_1, %c0_2] : memref<64x256xbf16, #tpu.memory_space<vmem>>, vector<64x256xbf16>
    %cst = arith.constant dense<0.000000e+00> : vector<8x256xf32>
    %3 = tpu.matmul %1, %2, %cst {dimension_numbers = #tpu.dot_dimension_numbers<[1], [0], [0], [1], [0, 0, 1, 1], [], []>} : vector<8x64xbf16>, vector<64x256xbf16>, vector<8x256xf32> -> vector<8x256xf32>
    %c0_3 = arith.constant 0 : index
    %c0_4 = arith.constant 0 : index
    %c0_5 = arith.constant 0 : index
    %4 = vector.load %arg1[%c0_3, %c0_4, %c0_5] : memref<2x4x256xf32, #tpu.memory_space<vmem>>, vector<1x4x256xf32>
    %5 = vector.shape_cast %4 : vector<1x4x256xf32> to vector<4x256xf32>
    %c0_6 = arith.constant 0 : index
    %c0_7 = arith.constant 0 : index
    %6 = vector.load %arg11[%c0_6, %c0_7] : memref<8x512xf32, #tpu.memory_space<vmem>>, vector<4x256xf32>
    tpu.vector_store %arg11[%c0_6, %c0_7], %5 {strides = array<i32>} : memref<8x512xf32, #tpu.memory_space<vmem>>, vector<4x256xf32>,
    %7 = vector.extract_strided_slice %3 {offsets = [0, 0], sizes = [4, 256], strides = [1, 1]} : vector<8x256xf32> to vector<4x256xf32>
    %c4 = arith.constant 4 : index
    %c0_8 = arith.constant 0 : index
    %8 = vector.load %arg11[%c4, %c0_8] : memref<8x512xf32, #tpu.memory_space<vmem>>, vector<4x256xf32>
    tpu.vector_store %arg11[%c4, %c0_8], %7 {strides = array<i32>} : memref<8x512xf32, #tpu.memory_space<vmem>>, vector<4x256xf32>,
    %c1 = arith.constant 1 : index
    %c0_9 = arith.constant 0 : index
    %c0_10 = arith.constant 0 : index
    %9 = vector.load %arg1[%c1, %c0_9, %c0_10] : memref<2x4x256xf32, #tpu.memory_space<vmem>>, vector<1x4x256xf32>
    %10 = vector.shape_cast %9 : vector<1x4x256xf32> to vector<4x256xf32>
    %c0_11 = arith.constant 0 : index
    %c256 = arith.constant 256 : index
    %11 = vector.load %arg11[%c0_11, %c256] : memref<8x512xf32, #tpu.memory_space<vmem>>, vector<4x256xf32>
    tpu.vector_store %arg11[%c0_11, %c256], %10 {strides = array<i32>} : memref<8x512xf32, #tpu.memory_space<vmem>>, vector<4x256xf32>,
    %12 = vector.extract_strided_slice %3 {offsets = [4, 0], sizes = [4, 256], strides = [1, 1]} : vector<8x256xf32> to vector<4x256xf32>
    %c4_12 = arith.constant 4 : index
    %c256_13 = arith.constant 256 : index
    %13 = vector.load %arg11[%c4_12, %c256_13] : memref<8x512xf32, #tpu.memory_space<vmem>>, vector<4x256xf32>
    tpu.vector_store %arg11[%c4_12, %c256_13], %12 {strides = array<i32>} : memref<8x512xf32, #tpu.memory_space<vmem>>, vector<4x256xf32>,
    %c0_14 = arith.constant 0 : index
    %c0_15 = arith.constant 0 : index
    %14 = vector.load %arg3[%c0_14, %c0_15] : memref<9x512xf32, #tpu.memory_space<vmem>>, vector<9x512xf32>
    %c0_16 = arith.constant 0 : index
    %c0_17 = arith.constant 0 : index
    %15 = vector.load %arg11[%c0_16, %c0_17] : memref<8x512xf32, #tpu.memory_space<vmem>>, vector<8x512xf32>
    %c0_18 = arith.constant 0 : index
    %c0_19 = arith.constant 0 : index
    %16 = vector.load %arg4[%c0_18, %c0_19] : memref<36x8xbf16, #tpu.memory_space<vmem>>, vector<36x8xbf16>
    %cst_20 = arith.constant 0.000000e+00 : f32
    %17 = vector.broadcast %cst_20 : f32 to vector<4x512xf32>
    %c17_i32 = arith.constant 17 : i32
    %18 = tpu.dynamic_rotate %15 by %c17_i32 dim 1 : vector<8x512xf32>, i32 -> vector<8x512xf32>
    %19 = vector.extract_strided_slice %16 {offsets = [0, 0], sizes = [4, 8], strides = [1, 1]} : vector<36x8xbf16> to vector<4x8xbf16>
    %20 = arith.truncf %18 : vector<8x512xf32> to vector<8x512xbf16>
    %cst_21 = arith.constant dense<0.000000e+00> : vector<4x512xf32>
    %21 = tpu.matmul %19, %20, %cst_21 {dimension_numbers = #tpu.dot_dimension_numbers<[1], [0], [0], [1], [0, 0, 1, 1], [], []>} : vector<4x8xbf16>, vector<8x512xbf16>, vector<4x512xf32> -> vector<4x512xf32>
    %22 = vector.extract_strided_slice %14 {offsets = [0, 0], sizes = [1, 512], strides = [1, 1]} : vector<9x512xf32> to vector<1x512xf32>
    %23 = vector.broadcast %22 : vector<1x512xf32> to vector<4x512xf32>
    %24 = arith.mulf %21, %23 : vector<4x512xf32>
    %25 = arith.addf %17, %24 : vector<4x512xf32>
    %c16_i32 = arith.constant 16 : i32
    %26 = tpu.dynamic_rotate %15 by %c16_i32 dim 1 : vector<8x512xf32>, i32 -> vector<8x512xf32>
    %27 = vector.extract_strided_slice %16 {offsets = [4, 0], sizes = [4, 8], strides = [1, 1]} : vector<36x8xbf16> to vector<4x8xbf16>
    %28 = arith.truncf %26 : vector<8x512xf32> to vector<8x512xbf16>
    %cst_22 = arith.constant dense<0.000000e+00> : vector<4x512xf32>
    %29 = tpu.matmul %27, %28, %cst_22 {dimension_numbers = #tpu.dot_dimension_numbers<[1], [0], [0], [1], [0, 0, 1, 1], [], []>} : vector<4x8xbf16>, vector<8x512xbf16>, vector<4x512xf32> -> vector<4x512xf32>
    %30 = vector.extract_strided_slice %14 {offsets = [1, 0], sizes = [1, 512], strides = [1, 1]} : vector<9x512xf32> to vector<1x512xf32>
    %31 = vector.broadcast %30 : vector<1x512xf32> to vector<4x512xf32>
    %32 = arith.mulf %29, %31 : vector<4x512xf32>
    %33 = arith.addf %25, %32 : vector<4x512xf32>
    %c15_i32 = arith.constant 15 : i32
    %34 = tpu.dynamic_rotate %15 by %c15_i32 dim 1 : vector<8x512xf32>, i32 -> vector<8x512xf32>
    %35 = vector.extract_strided_slice %16 {offsets = [8, 0], sizes = [4, 8], strides = [1, 1]} : vector<36x8xbf16> to vector<4x8xbf16>
    %36 = arith.truncf %34 : vector<8x512xf32> to vector<8x512xbf16>
    %cst_23 = arith.constant dense<0.000000e+00> : vector<4x512xf32>
    %37 = tpu.matmul %35, %36, %cst_23 {dimension_numbers = #tpu.dot_dimension_numbers<[1], [0], [0], [1], [0, 0, 1, 1], [], []>} : vector<4x8xbf16>, vector<8x512xbf16>, vector<4x512xf32> -> vector<4x512xf32>
    %38 = vector.extract_strided_slice %14 {offsets = [2, 0], sizes = [1, 512], strides = [1, 1]} : vector<9x512xf32> to vector<1x512xf32>
    %39 = vector.broadcast %38 : vector<1x512xf32> to vector<4x512xf32>
    %40 = arith.mulf %37, %39 : vector<4x512xf32>
    %41 = arith.addf %33, %40 : vector<4x512xf32>
    %c1_i32 = arith.constant 1 : i32
    %42 = tpu.dynamic_rotate %15 by %c1_i32 dim 1 : vector<8x512xf32>, i32 -> vector<8x512xf32>
    %43 = vector.extract_strided_slice %16 {offsets = [12, 0], sizes = [4, 8], strides = [1, 1]} : vector<36x8xbf16> to vector<4x8xbf16>
    %44 = arith.truncf %42 : vector<8x512xf32> to vector<8x512xbf16>
    %cst_24 = arith.constant dense<0.000000e+00> : vector<4x512xf32>
    %45 = tpu.matmul %43, %44, %cst_24 {dimension_numbers = #tpu.dot_dimension_numbers<[1], [0], [0], [1], [0, 0, 1, 1], [], []>} : vector<4x8xbf16>, vector<8x512xbf16>, vector<4x512xf32> -> vector<4x512xf32>
    %46 = vector.extract_strided_slice %14 {offsets = [3, 0], sizes = [1, 512], strides = [1, 1]} : vector<9x512xf32> to vector<1x512xf32>
    %47 = vector.broadcast %46 : vector<1x512xf32> to vector<4x512xf32>
    %48 = arith.mulf %45, %47 : vector<4x512xf32>
    %49 = arith.addf %41, %48 : vector<4x512xf32>
    %50 = vector.extract_strided_slice %16 {offsets = [16, 0], sizes = [4, 8], strides = [1, 1]} : vector<36x8xbf16> to vector<4x8xbf16>
    %51 = arith.truncf %15 : vector<8x512xf32> to vector<8x512xbf16>
    %cst_25 = arith.constant dense<0.000000e+00> : vector<4x512xf32>
    %52 = tpu.matmul %50, %51, %cst_25 {dimension_numbers = #tpu.dot_dimension_numbers<[1], [0], [0], [1], [0, 0, 1, 1], [], []>} : vector<4x8xbf16>, vector<8x512xbf16>, vector<4x512xf32> -> vector<4x512xf32>
    %53 = arith.addf %49, %52 : vector<4x512xf32>
    %c511_i32 = arith.constant 511 : i32
    %54 = tpu.dynamic_rotate %15 by %c511_i32 dim 1 : vector<8x512xf32>, i32 -> vector<8x512xf32>
    %55 = vector.extract_strided_slice %16 {offsets = [20, 0], sizes = [4, 8], strides = [1, 1]} : vector<36x8xbf16> to vector<4x8xbf16>
    %56 = arith.truncf %54 : vector<8x512xf32> to vector<8x512xbf16>
    %cst_26 = arith.constant dense<0.000000e+00> : vector<4x512xf32>
    %57 = tpu.matmul %55, %56, %cst_26 {dimension_numbers = #tpu.dot_dimension_numbers<[1], [0], [0], [1], [0, 0, 1, 1], [], []>} : vector<4x8xbf16>, vector<8x512xbf16>, vector<4x512xf32> -> vector<4x512xf32>
    %58 = vector.extract_strided_slice %14 {offsets = [5, 0], sizes = [1, 512], strides = [1, 1]} : vector<9x512xf32> to vector<1x512xf32>
    %59 = vector.broadcast %58 : vector<1x512xf32> to vector<4x512xf32>
    %60 = arith.mulf %57, %59 : vector<4x512xf32>
    %61 = arith.addf %53, %60 : vector<4x512xf32>
    %c497_i32 = arith.constant 497 : i32
    %62 = tpu.dynamic_rotate %15 by %c497_i32 dim 1 : vector<8x512xf32>, i32 -> vector<8x512xf32>
    %63 = vector.extract_strided_slice %16 {offsets = [24, 0], sizes = [4, 8], strides = [1, 1]} : vector<36x8xbf16> to vector<4x8xbf16>
    %64 = arith.truncf %62 : vector<8x512xf32> to vector<8x512xbf16>
    %cst_27 = arith.constant dense<0.000000e+00> : vector<4x512xf32>
    %65 = tpu.matmul %63, %64, %cst_27 {dimension_numbers = #tpu.dot_dimension_numbers<[1], [0], [0], [1], [0, 0, 1, 1], [], []>} : vector<4x8xbf16>, vector<8x512xbf16>, vector<4x512xf32> -> vector<4x512xf32>
    %66 = vector.extract_strided_slice %14 {offsets = [6, 0], sizes = [1, 512], strides = [1, 1]} : vector<9x512xf32> to vector<1x512xf32>
    %67 = vector.broadcast %66 : vector<1x512xf32> to vector<4x512xf32>
    %68 = arith.mulf %65, %67 : vector<4x512xf32>
    %69 = arith.addf %61, %68 : vector<4x512xf32>
    %c496_i32 = arith.constant 496 : i32
    %70 = tpu.dynamic_rotate %15 by %c496_i32 dim 1 : vector<8x512xf32>, i32 -> vector<8x512xf32>
    %71 = vector.extract_strided_slice %16 {offsets = [28, 0], sizes = [4, 8], strides = [1, 1]} : vector<36x8xbf16> to vector<4x8xbf16>
    %72 = arith.truncf %70 : vector<8x512xf32> to vector<8x512xbf16>
    %cst_28 = arith.constant dense<0.000000e+00> : vector<4x512xf32>
    %73 = tpu.matmul %71, %72, %cst_28 {dimension_numbers = #tpu.dot_dimension_numbers<[1], [0], [0], [1], [0, 0, 1, 1], [], []>} : vector<4x8xbf16>, vector<8x512xbf16>, vector<4x512xf32> -> vector<4x512xf32>
    %74 = vector.extract_strided_slice %14 {offsets = [7, 0], sizes = [1, 512], strides = [1, 1]} : vector<9x512xf32> to vector<1x512xf32>
    %75 = vector.broadcast %74 : vector<1x512xf32> to vector<4x512xf32>
    %76 = arith.mulf %73, %75 : vector<4x512xf32>
    %77 = arith.addf %69, %76 : vector<4x512xf32>
    %c495_i32 = arith.constant 495 : i32
    %78 = tpu.dynamic_rotate %15 by %c495_i32 dim 1 : vector<8x512xf32>, i32 -> vector<8x512xf32>
    %79 = vector.extract_strided_slice %16 {offsets = [32, 0], sizes = [4, 8], strides = [1, 1]} : vector<36x8xbf16> to vector<4x8xbf16>
    %80 = arith.truncf %78 : vector<8x512xf32> to vector<8x512xbf16>
    %cst_29 = arith.constant dense<0.000000e+00> : vector<4x512xf32>
    %81 = tpu.matmul %79, %80, %cst_29 {dimension_numbers = #tpu.dot_dimension_numbers<[1], [0], [0], [1], [0, 0, 1, 1], [], []>} : vector<4x8xbf16>, vector<8x512xbf16>, vector<4x512xf32> -> vector<4x512xf32>
    %82 = vector.extract_strided_slice %14 {offsets = [8, 0], sizes = [1, 512], strides = [1, 1]} : vector<9x512xf32> to vector<1x512xf32>
    %83 = vector.broadcast %82 : vector<1x512xf32> to vector<4x512xf32>
    %84 = arith.mulf %81, %83 : vector<4x512xf32>
    %85 = arith.addf %77, %84 : vector<4x512xf32>
    %c0_30 = arith.constant 0 : index
    %c0_31 = arith.constant 0 : index
    %86 = vector.load %arg5[%c0_30, %c0_31] : memref<4x1xf32, #tpu.memory_space<vmem>>, vector<4x1xf32>
    %87 = vector.broadcast %86 : vector<4x1xf32> to vector<4x512xf32>
    %88 = arith.mulf %85, %87 : vector<4x512xf32>
    %c0_32 = arith.constant 0 : index
    %c0_33 = arith.constant 0 : index
    %89 = vector.load %arg6[%c0_32, %c0_33] : memref<4x1xf32, #tpu.memory_space<vmem>>, vector<4x1xf32>
    %90 = vector.broadcast %89 : vector<4x1xf32> to vector<4x512xf32>
    %91 = arith.addf %88, %90 : vector<4x512xf32>
    %cst_34 = arith.constant 0.000000e+00 : f32
    %92 = vector.broadcast %cst_34 : f32 to vector<4x512xf32>
    %93 = arith.maximumf %91, %92 : vector<4x512xf32>
    %c0_35 = arith.constant 0 : index
    %c0_36 = arith.constant 0 : index
    %94 = vector.load %arg7[%c0_35, %c0_36] : memref<36x4xbf16, #tpu.memory_space<vmem>>, vector<36x4xbf16>
    %cst_37 = arith.constant 0.000000e+00 : f32
    %95 = vector.broadcast %cst_37 : f32 to vector<4x512xf32>
    %c17_i32_38 = arith.constant 17 : i32
    %96 = tpu.dynamic_rotate %93 by %c17_i32_38 dim 1 : vector<4x512xf32>, i32 -> vector<4x512xf32>
    %97 = vector.extract_strided_slice %94 {offsets = [0, 0], sizes = [4, 4], strides = [1, 1]} : vector<36x4xbf16> to vector<4x4xbf16>
    %98 = arith.truncf %96 : vector<4x512xf32> to vector<4x512xbf16>
    %cst_39 = arith.constant dense<0.000000e+00> : vector<4x512xf32>
    %99 = tpu.matmul %97, %98, %cst_39 {dimension_numbers = #tpu.dot_dimension_numbers<[1], [0], [0], [1], [0, 0, 1, 1], [], []>} : vector<4x4xbf16>, vector<4x512xbf16>, vector<4x512xf32> -> vector<4x512xf32>
    %100 = vector.extract_strided_slice %14 {offsets = [0, 0], sizes = [1, 512], strides = [1, 1]} : vector<9x512xf32> to vector<1x512xf32>
    %101 = vector.broadcast %100 : vector<1x512xf32> to vector<4x512xf32>
    %102 = arith.mulf %99, %101 : vector<4x512xf32>
    %103 = arith.addf %95, %102 : vector<4x512xf32>
    %c16_i32_40 = arith.constant 16 : i32
    %104 = tpu.dynamic_rotate %93 by %c16_i32_40 dim 1 : vector<4x512xf32>, i32 -> vector<4x512xf32>
    %105 = vector.extract_strided_slice %94 {offsets = [4, 0], sizes = [4, 4], strides = [1, 1]} : vector<36x4xbf16> to vector<4x4xbf16>
    %106 = arith.truncf %104 : vector<4x512xf32> to vector<4x512xbf16>
    %cst_41 = arith.constant dense<0.000000e+00> : vector<4x512xf32>
    %107 = tpu.matmul %105, %106, %cst_41 {dimension_numbers = #tpu.dot_dimension_numbers<[1], [0], [0], [1], [0, 0, 1, 1], [], []>} : vector<4x4xbf16>, vector<4x512xbf16>, vector<4x512xf32> -> vector<4x512xf32>
    %108 = vector.extract_strided_slice %14 {offsets = [1, 0], sizes = [1, 512], strides = [1, 1]} : vector<9x512xf32> to vector<1x512xf32>
    %109 = vector.broadcast %108 : vector<1x512xf32> to vector<4x512xf32>
    %110 = arith.mulf %107, %109 : vector<4x512xf32>
    %111 = arith.addf %103, %110 : vector<4x512xf32>
    %c15_i32_42 = arith.constant 15 : i32
    %112 = tpu.dynamic_rotate %93 by %c15_i32_42 dim 1 : vector<4x512xf32>, i32 -> vector<4x512xf32>
    %113 = vector.extract_strided_slice %94 {offsets = [8, 0], sizes = [4, 4], strides = [1, 1]} : vector<36x4xbf16> to vector<4x4xbf16>
    %114 = arith.truncf %112 : vector<4x512xf32> to vector<4x512xbf16>
    %cst_43 = arith.constant dense<0.000000e+00> : vector<4x512xf32>
    %115 = tpu.matmul %113, %114, %cst_43 {dimension_numbers = #tpu.dot_dimension_numbers<[1], [0], [0], [1], [0, 0, 1, 1], [], []>} : vector<4x4xbf16>, vector<4x512xbf16>, vector<4x512xf32> -> vector<4x512xf32>
    %116 = vector.extract_strided_slice %14 {offsets = [2, 0], sizes = [1, 512], strides = [1, 1]} : vector<9x512xf32> to vector<1x512xf32>
    %117 = vector.broadcast %116 : vector<1x512xf32> to vector<4x512xf32>
    %118 = arith.mulf %115, %117 : vector<4x512xf32>
    %119 = arith.addf %111, %118 : vector<4x512xf32>
    %c1_i32_44 = arith.constant 1 : i32
    %120 = tpu.dynamic_rotate %93 by %c1_i32_44 dim 1 : vector<4x512xf32>, i32 -> vector<4x512xf32>
    %121 = vector.extract_strided_slice %94 {offsets = [12, 0], sizes = [4, 4], strides = [1, 1]} : vector<36x4xbf16> to vector<4x4xbf16>
    %122 = arith.truncf %120 : vector<4x512xf32> to vector<4x512xbf16>
    %cst_45 = arith.constant dense<0.000000e+00> : vector<4x512xf32>
    %123 = tpu.matmul %121, %122, %cst_45 {dimension_numbers = #tpu.dot_dimension_numbers<[1], [0], [0], [1], [0, 0, 1, 1], [], []>} : vector<4x4xbf16>, vector<4x512xbf16>, vector<4x512xf32> -> vector<4x512xf32>
    %124 = vector.extract_strided_slice %14 {offsets = [3, 0], sizes = [1, 512], strides = [1, 1]} : vector<9x512xf32> to vector<1x512xf32>
    %125 = vector.broadcast %124 : vector<1x512xf32> to vector<4x512xf32>
    %126 = arith.mulf %123, %125 : vector<4x512xf32>
    %127 = arith.addf %119, %126 : vector<4x512xf32>
    %128 = vector.extract_strided_slice %94 {offsets = [16, 0], sizes = [4, 4], strides = [1, 1]} : vector<36x4xbf16> to vector<4x4xbf16>
    %129 = arith.truncf %93 : vector<4x512xf32> to vector<4x512xbf16>
    %cst_46 = arith.constant dense<0.000000e+00> : vector<4x512xf32>
    %130 = tpu.matmul %128, %129, %cst_46 {dimension_numbers = #tpu.dot_dimension_numbers<[1], [0], [0], [1], [0, 0, 1, 1], [], []>} : vector<4x4xbf16>, vector<4x512xbf16>, vector<4x512xf32> -> vector<4x512xf32>
    %131 = arith.addf %127, %130 : vector<4x512xf32>
    %c511_i32_47 = arith.constant 511 : i32
    %132 = tpu.dynamic_rotate %93 by %c511_i32_47 dim 1 : vector<4x512xf32>, i32 -> vector<4x512xf32>
    %133 = vector.extract_strided_slice %94 {offsets = [20, 0], sizes = [4, 4], strides = [1, 1]} : vector<36x4xbf16> to vector<4x4xbf16>
    %134 = arith.truncf %132 : vector<4x512xf32> to vector<4x512xbf16>
    %cst_48 = arith.constant dense<0.000000e+00> : vector<4x512xf32>
    %135 = tpu.matmul %133, %134, %cst_48 {dimension_numbers = #tpu.dot_dimension_numbers<[1], [0], [0], [1], [0, 0, 1, 1], [], []>} : vector<4x4xbf16>, vector<4x512xbf16>, vector<4x512xf32> -> vector<4x512xf32>
    %136 = vector.extract_strided_slice %14 {offsets = [5, 0], sizes = [1, 512], strides = [1, 1]} : vector<9x512xf32> to vector<1x512xf32>
    %137 = vector.broadcast %136 : vector<1x512xf32> to vector<4x512xf32>
    %138 = arith.mulf %135, %137 : vector<4x512xf32>
    %139 = arith.addf %131, %138 : vector<4x512xf32>
    %c497_i32_49 = arith.constant 497 : i32
    %140 = tpu.dynamic_rotate %93 by %c497_i32_49 dim 1 : vector<4x512xf32>, i32 -> vector<4x512xf32>
    %141 = vector.extract_strided_slice %94 {offsets = [24, 0], sizes = [4, 4], strides = [1, 1]} : vector<36x4xbf16> to vector<4x4xbf16>
    %142 = arith.truncf %140 : vector<4x512xf32> to vector<4x512xbf16>
    %cst_50 = arith.constant dense<0.000000e+00> : vector<4x512xf32>
    %143 = tpu.matmul %141, %142, %cst_50 {dimension_numbers = #tpu.dot_dimension_numbers<[1], [0], [0], [1], [0, 0, 1, 1], [], []>} : vector<4x4xbf16>, vector<4x512xbf16>, vector<4x512xf32> -> vector<4x512xf32>
    %144 = vector.extract_strided_slice %14 {offsets = [6, 0], sizes = [1, 512], strides = [1, 1]} : vector<9x512xf32> to vector<1x512xf32>
    %145 = vector.broadcast %144 : vector<1x512xf32> to vector<4x512xf32>
    %146 = arith.mulf %143, %145 : vector<4x512xf32>
    %147 = arith.addf %139, %146 : vector<4x512xf32>
    %c496_i32_51 = arith.constant 496 : i32
    %148 = tpu.dynamic_rotate %93 by %c496_i32_51 dim 1 : vector<4x512xf32>, i32 -> vector<4x512xf32>
    %149 = vector.extract_strided_slice %94 {offsets = [28, 0], sizes = [4, 4], strides = [1, 1]} : vector<36x4xbf16> to vector<4x4xbf16>
    %150 = arith.truncf %148 : vector<4x512xf32> to vector<4x512xbf16>
    %cst_52 = arith.constant dense<0.000000e+00> : vector<4x512xf32>
    %151 = tpu.matmul %149, %150, %cst_52 {dimension_numbers = #tpu.dot_dimension_numbers<[1], [0], [0], [1], [0, 0, 1, 1], [], []>} : vector<4x4xbf16>, vector<4x512xbf16>, vector<4x512xf32> -> vector<4x512xf32>
    %152 = vector.extract_strided_slice %14 {offsets = [7, 0], sizes = [1, 512], strides = [1, 1]} : vector<9x512xf32> to vector<1x512xf32>
    %153 = vector.broadcast %152 : vector<1x512xf32> to vector<4x512xf32>
    %154 = arith.mulf %151, %153 : vector<4x512xf32>
    %155 = arith.addf %147, %154 : vector<4x512xf32>
    %c495_i32_53 = arith.constant 495 : i32
    %156 = tpu.dynamic_rotate %93 by %c495_i32_53 dim 1 : vector<4x512xf32>, i32 -> vector<4x512xf32>
    %157 = vector.extract_strided_slice %94 {offsets = [32, 0], sizes = [4, 4], strides = [1, 1]} : vector<36x4xbf16> to vector<4x4xbf16>
    %158 = arith.truncf %156 : vector<4x512xf32> to vector<4x512xbf16>
    %cst_54 = arith.constant dense<0.000000e+00> : vector<4x512xf32>
    %159 = tpu.matmul %157, %158, %cst_54 {dimension_numbers = #tpu.dot_dimension_numbers<[1], [0], [0], [1], [0, 0, 1, 1], [], []>} : vector<4x4xbf16>, vector<4x512xbf16>, vector<4x512xf32> -> vector<4x512xf32>
    %160 = vector.extract_strided_slice %14 {offsets = [8, 0], sizes = [1, 512], strides = [1, 1]} : vector<9x512xf32> to vector<1x512xf32>
    %161 = vector.broadcast %160 : vector<1x512xf32> to vector<4x512xf32>
    %162 = arith.mulf %159, %161 : vector<4x512xf32>
    %163 = arith.addf %155, %162 : vector<4x512xf32>
    %c0_55 = arith.constant 0 : index
    %c0_56 = arith.constant 0 : index
    %164 = vector.load %arg8[%c0_55, %c0_56] : memref<4x1xf32, #tpu.memory_space<vmem>>, vector<4x1xf32>
    %165 = vector.broadcast %164 : vector<4x1xf32> to vector<4x512xf32>
    %166 = arith.mulf %163, %165 : vector<4x512xf32>
    %c0_57 = arith.constant 0 : index
    %c0_58 = arith.constant 0 : index
    %167 = vector.load %arg9[%c0_57, %c0_58] : memref<4x1xf32, #tpu.memory_space<vmem>>, vector<4x1xf32>
    %168 = vector.broadcast %167 : vector<4x1xf32> to vector<4x512xf32>
    %169 = arith.addf %166, %168 : vector<4x512xf32>
    %cst_59 = arith.constant 0.000000e+00 : f32
    %170 = vector.broadcast %cst_59 : f32 to vector<4x512xf32>
    %171 = arith.maximumf %169, %170 : vector<4x512xf32>
    %172 = vector.extract_strided_slice %171 {offsets = [0, 0], sizes = [4, 256], strides = [1, 1]} : vector<4x512xf32> to vector<4x256xf32>
    %c0_60 = arith.constant 0 : index
    %c0_61 = arith.constant 0 : index
    %c0_62 = arith.constant 0 : index
    %173 = vector.load %arg10[%c0_60, %c0_61, %c0_62] : memref<2x4x256xf32, #tpu.memory_space<vmem>>, vector<1x4x256xf32>
    %174 = vector.shape_cast %173 : vector<1x4x256xf32> to vector<4x256xf32>
    %175 = vector.shape_cast %172 : vector<4x256xf32> to vector<1x4x256xf32>
    tpu.vector_store %arg10[%c0_60, %c0_61, %c0_62], %175 {strides = array<i32>} : memref<2x4x256xf32, #tpu.memory_space<vmem>>, vector<1x4x256xf32>,
    %176 = vector.extract_strided_slice %171 {offsets = [0, 256], sizes = [4, 256], strides = [1, 1]} : vector<4x512xf32> to vector<4x256xf32>
    %c1_63 = arith.constant 1 : index
    %c0_64 = arith.constant 0 : index
    %c0_65 = arith.constant 0 : index
    %177 = vector.load %arg10[%c1_63, %c0_64, %c0_65] : memref<2x4x256xf32, #tpu.memory_space<vmem>>, vector<1x4x256xf32>
    %178 = vector.shape_cast %177 : vector<1x4x256xf32> to vector<4x256xf32>
    %179 = vector.shape_cast %176 : vector<4x256xf32> to vector<1x4x256xf32>
    tpu.vector_store %arg10[%c1_63, %c0_64, %c0_65], %179 {strides = array<i32>} : memref<2x4x256xf32, #tpu.memory_space<vmem>>, vector<1x4x256xf32>,
    return
  }
}

</mosaic_0001>

<bundles_post_ra>
// kernel: up_forward_impl.1
= control target key start
LH: loop header
LB: loop body
LE: loop exit
PB: predicated region body
PF: predicated region fallthrough
CT: control target
= control target key end

     0   :  { %v3641_v1 = vmov 0   ;;  %vm86_vm0 = vcmask 523264   ;;  %s2846_s15 = smov 1   ;;  %s2847_s16 = smov 127   ;;  %v179_v29 = vlaneseq  ;;  %vm194_vm2 = vcmask 1043456   ;;  %s3630_s2 = inlined_call_operand.vmem [shape: bf16[64,256], index: 2, kind: input, shape index: {}]   ;;  %s3631_s0 = inlined_call_operand.vmem [shape: f32[8,64], index: 0, kind: input, shape index: {}]   ;;  %s3632_s1 = inlined_call_operand.vmem [shape: f32[2,4,256], index: 1, kind: input, shape index: {}]   ;;  %s3633_s5 = inlined_call_operand.vmem [shape: f32[4,1], index: 5, kind: input, shape index: {}]   ;;  %s3634_s6 = inlined_call_operand.vmem [shape: f32[4,1], index: 6, kind: input, shape index: {}]   ;;  %s3635_s4 = inlined_call_operand.vmem [shape: bf16[36,8], index: 4, kind: input, shape index: {}]   ;;  %s3636_s3 = inlined_call_operand.vmem [shape: f32[9,512], index: 3, kind: input, shape index: {}]   ;;  %s3637_s8 = inlined_call_operand.vmem [shape: f32[4,1], index: 8, kind: input, shape index: {}]   ;;  %s3638_s9 = inlined_call_operand.vmem [shape: f32[4,1], index: 9, kind: input, shape index: {}]   ;;  %s3639_s7 = inlined_call_operand.vmem [shape: bf16[36,4], index: 7, kind: input, shape index: {}]   ;;  %s3640_s10 = inlined_call_operand.vmem [shape: f32[2,4,256], index: 10, kind: output, shape index: {}]  }
   0x1   :  { %v2820_v0 = vld [vmem:[%s3630_s2 + $0x34] ss:$8 sps:$4 sm:$0xff]   ;;  %122 = vmatprep.mubr.bf16.mxu0 %v3641_v1  ;;  %239 = vmatprep.mubr.bf16.mxu1 %v3641_v1  ;;  %v2822_v2 = vld [vmem:[%s3630_s2 + $0x30] ss:$8 sps:$4 sm:$0xff]   ;;  %v2823_v3 = vld [vmem:[%s3630_s2 + $0x24] ss:$8 sps:$4 sm:$0xff]  }
   0x2   :  { %2738 = vset.pattern.permute.xlu1 %v3641_v1  ;;  %2739 = vset.pattern.permute.xlu0 %v3641_v1  ;;  %v2825_v4 = vld [vmem:[%s3630_s2 + $0x20] ss:$8 sps:$4 sm:$0xff]   ;;  %v2826_v5 = vld [vmem:[%s3630_s2 + $0x14] ss:$8 sps:$4 sm:$0xff]   ;;  %v2828_v6 = vld [vmem:[%s3630_s2 + $0x10] ss:$8 sps:$4 sm:$0xff]  }
   0x3   :  { %98 = vmatprep.subr.bf16.mxu0 %v2820_v0  ;;  %v2829_v7 = vld [vmem:[%s3630_s2 + $0x4] ss:$8 sps:$4 sm:$0xff]   ;;  %v2831_v8 = vld [vmem:[%s3630_s2] ss:$8 sps:$4 sm:$0xff]   ;;  %s2845_s2 = smov 15   ;;  %s2848_s17 = smov 113  }
   0x4   :  { %99 = vmatpush1.bf16.msra.mxu0 %v2822_v2  ;;  %v36_v9 = vld [vmem:[%s3631_s0] sm:$0xff]  ;;  %v2568_v11 = vld [vmem:[%s3632_s1 + $0x8] sm:$0xff]  ;;  %s2843_s0 = smov 17   ;;  %s2849_s18 = smov 112   ;;  %v2982_v30 = vand.u32 127, %v179_v29  ;;  %vm190_vm4 = vcmask 64512  }
   0x5   :  { %100 = vmatprep.subr.bf16.mxu0 %v2823_v3  ;;  %v37_v10 = vpack.c.bf16 %v36_v9, %v36_v9  ;;  %150 = vst [vmem:[#allocation2 + $0x18] sm:$0xf] %v2568_v11  ;;  %v148_v12 = vcombine.high %v2568_v11, %v2568_v11  ;;  %v131_v13 = vld [vmem:[%s3632_s1] sm:$0xff]  ;;  %s2844_s1 = smov 16   ;;  %s2850_s19 = smov 111   ;;  %vm1449_vm11 = vcmask 1041408  }
   0x6   :  { %v133_v14 = vcombine.high %v131_v13, %v131_v13  ;;  %135 = vst [vmem:[#allocation2 + $0x10] sm:$0xf] %v131_v13  ;;  %v1400_v27 = vld [vmem:[%s3633_s5] sm:$0xf]  ;;  %vm181_vm1 = vcmp.lt.s32.totalorder %v2982_v30, 17  ;;  %vm321_vm3 = vcmp.lt.s32.totalorder %v2982_v30, 16 }
   0x7   :  { %151 = vst [vmem:[#allocation2 + $0x8] sm:$0xf] %v148_v12  ;;  %v1410_v28 = vld [vmem:[%s3634_s6] sm:$0xf]  ;;  %vm463_vm5 = vcmp.lt.s32.totalorder %v2982_v30, 15  ;;  %vm601_vm6 = vcmp.lt.s32.totalorder %v2982_v30, 1 }
   0x8   :  { %101 = vmatpush1.bf16.msra.mxu0 %v2825_v4  ;;  %136 = vst [vmem:[#allocation2] sm:$0xf] %v133_v14  ;;  %v166_v53 = vld [vmem:[%s3635_s4] sm:$0xf]  ;;  %vm848_vm7 = vcmp.lt.s32.totalorder %v2982_v30, 127  ;;  %vm990_vm8 = vcmp.lt.s32.totalorder %v2982_v30, 113 }
   0x9   :  { %102 = vmatprep.subr.bf16.mxu0 %v2826_v5  ;;  %v2573_v54 = vcombine.low %v166_v53, %v166_v53  ;;  %vm1128_vm9 = vcmp.lt.s32.totalorder %v2982_v30, 112  ;;  %vm1270_vm10 = vcmp.lt.s32.totalorder %v2982_v30, 111  ;;  %vm1445_vm12 = vcmask 31744  }
   0xb   :  { %v333_v5 = vrot.slane %v2573_v54, 2 }
   0xc   :  { %103 = vmatpush1.bf16.msra.mxu0 %v2828_v6 }
   0xd   :  { %104 = vmatprep.subr.bf16.mxu0 %v2829_v7 }
  0x10   :  { %105 = vmatpush1.bf16.msra.mxu0 %v2831_v8 }
  0x13   :  { %2567 = vmatmul.mubr.msk.bf16.vlgmr.msra.gmra.mxu0 %vm86_vm0, %v37_v10 }
  0x14   :  { %422 = vmatprep.mubr.bf16.mxu0 %v3641_v1 }
  0xd3   :  { %v124_v15 = vpop.f32.mrf.mxu0 }
  0xd4   :  { %v139_v16 = vrot.slane %v124_v15, 4  ;;  %152 = vst [vmem:[#allocation2 + $0x18] sm:$0xf0] %v124_v15 }
  0xd5   :  { %v126_v17 = vpop.f32.mrf.mxu0 }
  0xd6   :  { %143 = vst [vmem:[#allocation2 + $0x10] sm:$0xf0] %v139_v16  ;;  %v140_v18 = vrot.slane %v126_v17, 4  ;;  %153 = vst [vmem:[#allocation2 + $0x8] sm:$0xf0] %v126_v17 }
  0xd7   :  { %v128_v19 = vpop.f32.mrf.mxu0 }
  0xd8   :  { %144 = vst [vmem:[#allocation2] sm:$0xf0] %v140_v18 }
  0xd9   :  { %v129_v20 = vpop.f32.mrf.mxu0 }
  0xdb   :  { %v2944_v21 = vld [vmem:[#allocation2 + $0x18] sm:$0xff] }
  0xdc   :  { %175 = vrot.lane.b32.xlu1 %v2944_v21, %s2843_s0 }
  0xdd   :  { %v2948_v22 = vld [vmem:[#allocation2 + $0x10] sm:$0xff]  ;;  %v2956_v25 = vld [vmem:[#allocation2 + $0x8] sm:$0xff] }
  0xde   :  { %v2673_v26 = vpack.i.bf16 %v2956_v25, %v2944_v21 }
  0xdf   :  { %v2950_v23 = vld [vmem:[#allocation2] sm:$0xff] }
  0xe0   :  { %v2668_v24 = vpack.i.bf16 %v2950_v23, %v2948_v22 }
  0xe2   :  { %2669 = vrot.lane.b32.xlu1 %v2668_v24, %s2844_s1  ;;  %2664 = vrot.lane.b32.xlu0 %v2668_v24, %s2843_s0 }
  0xe6   :  { %2679 = vrot.lane.b32.xlu1 %v2668_v24, %s2845_s2  ;;  %177 = vrot.lane.b32.xlu0 %v2956_v25, %s2843_s0 }
  0xea   :  { %2689 = vrot.lane.b32.xlu1 %v2668_v24, %s2846_s15  ;;  %2674 = vrot.lane.b32.xlu0 %v2673_v26, %s2844_s1 }
  0xee   :  { %2699 = vrot.lane.b32.xlu1 %v2668_v24, %s2847_s16  ;;  %2684 = vrot.lane.b32.xlu0 %v2673_v26, %s2845_s2 }
  0xf2   :  { %2709 = vrot.lane.b32.xlu1 %v2668_v24, %s2848_s17  ;;  %2694 = vrot.lane.b32.xlu0 %v2673_v26, %s2846_s15 }
  0xf6   :  { %2719 = vrot.lane.b32.xlu1 %v2668_v24, %s2849_s18  ;;  %2704 = vrot.lane.b32.xlu0 %v2673_v26, %s2847_s16 }
  0xfa   :  { %2729 = vrot.lane.b32.xlu1 %v2668_v24, %s2850_s19  ;;  %2714 = vrot.lane.b32.xlu0 %v2673_v26, %s2848_s17 }
  0xfe   :  { %2724 = vrot.lane.b32.xlu0 %v2673_v26, %s2849_s18  ;;  %1403 = vperm.xlu1 %2738, %v1400_v27  }
 0x102   :  { %2734 = vrot.lane.b32.xlu0 %v2673_v26, %s2850_s19 }
 0x106   :  { %1413 = vperm.xlu0 %2739, %v1410_v28  }
 0x14e   :  { %v176_v31 = vpop.permute.xlu1 %175 }
 0x154   :  { %v2665_v32 = vpop.permute.xlu0 %2664  ;;  %v2670_v33 = vpop.permute.xlu1 %2669 }
 0x155   :  { %v2667_v34 = vunpack.i.h.bf16 %v2665_v32  ;;  %v2666_v35 = vunpack.i.l.bf16 %v2665_v32  ;;  %v2672_v37 = vunpack.i.h.bf16 %v2670_v33  ;;  %v2671_v38 = vunpack.i.l.bf16 %v2670_v33  ;;  %v167_v32 = vld [vmem:[%s3635_s4 + $0x4] sm:$0xf] }
 0x157   :  { %v184_v36 = vsel %vm181_vm1, %v2666_v35, %v2667_v34  ;;  %v183_v43 = vsel %vm181_vm1, %v2667_v34, %v176_v31  ;;  %v324_v45 = vsel %vm321_vm3, %v2671_v38, %v2672_v37 }
 0x158   :  { %v178_v39 = vpop.permute.xlu0 %177  ;;  %v187_v40 = vpack.c.bf16 %v184_v36, %v184_v36  ;;  %v2680_v46 = vpop.permute.xlu1 %2679  ;;  %v188_v50 = vpack.c.bf16 %v183_v43, %v183_v43  ;;  %v327_v55 = vpack.c.bf16 %v324_v45, %v324_v45  ;;  %v737_v45 = vpack.c.bf16 %v2944_v21, %v2944_v21 }
 0x159   :  { %v182_v41 = vsel %vm181_vm1, %v176_v31, %v178_v39  ;;  %v185_v42 = vsel %vm181_vm1, %v178_v39, %v2666_v35  ;;  %v2682_v58 = vunpack.i.h.bf16 %v2680_v46  ;;  %v2681_v63 = vunpack.i.l.bf16 %v2680_v46 }
 0x15a   :  { %v186_v44 = vpack.c.bf16 %v185_v42, %v185_v42  ;;  %2569 = vmatprep.subr.msk.bf16.mxu1 %vm194_vm2, %v187_v40  ;;  %v189_v47 = vpack.c.bf16 %v182_v41, %v182_v41  ;;  %v202_v61 = vsel %vm194_vm2, %v188_v50, 0  ;;  %v738_v39 = vpack.c.bf16 %v2956_v25, %v2956_v25 }
 0x15b   :  { %v466_v13 = vsel %vm463_vm5, %v2681_v63, %v2682_v58 }
 0x15c   :  { %v2675_v48 = vpop.permute.xlu0 %2674  ;;  %v196_v49 = vsel %vm194_vm2, %v186_v44, 0  ;;  %v2690_v4 = vpop.permute.xlu1 %2689  ;;  %v469_v20 = vpack.c.bf16 %v466_v13, %v466_v13 }
 0x15d   :  { %v2677_v51 = vunpack.i.h.bf16 %v2675_v48  ;;  %v2676_v52 = vunpack.i.l.bf16 %v2675_v48  ;;  %222 = vmatpush1.bf16.msra.mxu1 %v196_v49  ;;  %v2692_v14 = vunpack.i.h.bf16 %v2690_v4  ;;  %v2691_v27 = vunpack.i.l.bf16 %v2690_v4 }
 0x15e   :  { %2571 = vmatprep.subr.msk.bf16.mxu1 %vm194_vm2, %v189_v47 }
 0x15f   :  { %v322_v56 = vsel %vm321_vm3, %v2676_v52, %v2677_v51  ;;  %v323_v57 = vsel %vm321_vm3, %v2672_v37, %v2676_v52  ;;  %v325_v3 = vsel %vm321_vm3, %v2677_v51, %v2671_v38  ;;  %v604_v35 = vsel %vm601_vm6, %v2691_v27, %v2692_v14 }
 0x160   :  { %v329_v59 = vpack.c.bf16 %v322_v56, %v322_v56  ;;  %v2685_v60 = vpop.permute.xlu0 %2684  ;;  %2570 = vmatmul.mubr.msk.bf16.vlgmr.msra.gmra.mxu1 %vm190_vm4, %v166_v53  ;;  %v328_v62 = vpack.c.bf16 %v323_v57, %v323_v57  ;;  %v326_v12 = vpack.c.bf16 %v325_v3, %v325_v3  ;;  %v3042_v36 = vpop.permute.xlu1 %2699  ;;  %v2582_v37 = vcombine.low %v167_v32, %v167_v32 }
 0x161   :  { %v2687_v0 = vunpack.i.h.bf16 %v2685_v60  ;;  %v2686_v2 = vunpack.i.l.bf16 %v2685_v60  ;;  %263 = vmatpush1.bf16.msra.mxu1 %v202_v61  ;;  %280 = vmatprep.mubr.bf16.mxu1 %v3641_v1  ;;  %v607_v41 = vpack.c.bf16 %v604_v35, %v604_v35  ;;  %v2701_v43 = vunpack.i.l.bf16 %v3042_v36 }
 0x162   :  { %2574 = vmatprep.subr.msk.bf16.mxu1 %vm194_vm2, %v327_v55  ;;  %2576 = vmatprep.subr.msk.bf16.mxu0 %vm194_vm2, %v329_v59  ;;  %v344_v6 = vsel %vm194_vm2, %v328_v62, 0  ;;  %v338_v26 = vsel %vm194_vm2, %v326_v12, 0  ;;  %v613_v25 = vrot.slane %v2582_v37, 2  ;;  %v749_v52 = vsel %vm194_vm2, %v737_v45, 0  ;;  %v169_v37 = vld [vmem:[%s3635_s4 + $0xc] sm:$0xf] }
 0x163   :  { %v464_v7 = vsel %vm463_vm5, %v2686_v2, %v2687_v0  ;;  %405 = vmatpush1.bf16.msra.mxu0 %v344_v6  ;;  %v465_v8 = vsel %vm463_vm5, %v2682_v58, %v2686_v2  ;;  %v467_v28 = vsel %vm463_vm5, %v2687_v0, %v2681_v63  ;;  %v736_v55 = vpack.c.bf16 %v2950_v23, %v2950_v23  ;;  %v168_v23 = vld [vmem:[%s3635_s4 + $0x8] sm:$0xf] }
 0x164   :  { %v471_v9 = vpack.c.bf16 %v464_v7, %v464_v7  ;;  %v2695_v10 = vpop.permute.xlu0 %2694  ;;  %v470_v11 = vpack.c.bf16 %v465_v8, %v465_v8  ;;  %v468_v34 = vpack.c.bf16 %v467_v28, %v467_v28  ;;  %v3062_v50 = vpop.permute.xlu1 %2709  ;;  %v2702_v58 = vunpack.i.h.bf16 %v3042_v36 }
 0x165   :  { %v2697_v15 = vunpack.i.h.bf16 %v2695_v10  ;;  %v2696_v16 = vunpack.i.l.bf16 %v2695_v10  ;;  %v2711_v56 = vunpack.i.l.bf16 %v3062_v50  ;;  %v735_v62 = vpack.c.bf16 %v2948_v22, %v2948_v22 }
 0x166   :  { %2577 = vmatmul.mubr.msk.bf16.vlgmr.msra.gmra.mxu0 %vm190_vm4, %v333_v5  ;;  %2580 = vmatprep.subr.msk.bf16.mxu0 %vm194_vm2, %v471_v9  ;;  %v482_v17 = vsel %vm194_vm2, %v470_v11, 0  ;;  %v476_v42 = vsel %vm194_vm2, %v468_v34, 0  ;;  %v2591_v3 = vcombine.low %v168_v23, %v168_v23  ;;  %v851_v9 = vsel %vm848_vm7, %v2701_v43, %v2702_v58 }
 0x167   :  { %v602_v18 = vsel %vm601_vm6, %v2696_v16, %v2697_v15  ;;  %543 = vmatpush1.bf16.msra.mxu0 %v482_v17  ;;  %560 = vmatprep.mubr.bf16.mxu0 %v3641_v1  ;;  %v603_v19 = vsel %vm601_vm6, %v2692_v14, %v2696_v16  ;;  %v605_v44 = vsel %vm601_vm6, %v2697_v15, %v2691_v27  ;;  %v743_v22 = vsel %vm194_vm2, %v735_v62, 0 }
 0x168   :  { %v609_v24 = vpack.c.bf16 %v602_v18, %v602_v18  ;;  %2572 = vmatmul.mubr.msk.bf16.vlgmr.msra.gmra.mxu1 %vm190_vm4, %v166_v53  ;;  %v608_v31 = vpack.c.bf16 %v603_v19, %v603_v19  ;;  %v2705_v33 = vpop.permute.xlu0 %2704  ;;  %v606_v49 = vpack.c.bf16 %v605_v44, %v605_v44  ;;  %v3088_v0 = vpop.permute.xlu1 %2719  ;;  %v860_v10 = vrot.slane %v2591_v3, 2 }
 0x169   :  { %364 = vmatpush1.bf16.msra.mxu1 %v338_v26  ;;  %381 = vmatprep.mubr.bf16.mxu1 %v3641_v1  ;;  %v2707_v40 = vunpack.i.h.bf16 %v2705_v33  ;;  %v2706_v47 = vunpack.i.l.bf16 %v2705_v33  ;;  %v2721_v8 = vunpack.i.l.bf16 %v3088_v0  ;;  %v2712_v12 = vunpack.i.h.bf16 %v3062_v50 }
 0x16a   :  { %2578 = vmatprep.subr.msk.bf16.mxu1 %vm194_vm2, %v469_v20  ;;  %2585 = vmatprep.subr.msk.bf16.mxu0 %vm194_vm2, %v609_v24  ;;  %v624_v38 = vsel %vm194_vm2, %v608_v31, 0  ;;  %v618_v54 = vsel %vm194_vm2, %v606_v49, 0  ;;  %v853_v16 = vpack.c.bf16 %v851_v9, %v851_v9  ;;  %v2722_v34 = vunpack.i.h.bf16 %v3088_v0 }
 0x16b   :  { %v852_v46 = vsel %vm848_vm7, %v2707_v40, %v2701_v43  ;;  %v849_v21 = vsel %vm848_vm7, %v2706_v47, %v2707_v40  ;;  %v850_v63 = vsel %vm848_vm7, %v2702_v58, %v2706_v47 }
 0x16c   :  { %v2715_v48 = vpop.permute.xlu0 %2714  ;;  %v856_v51 = vpack.c.bf16 %v852_v46, %v852_v46  ;;  %v855_v57 = vpack.c.bf16 %v849_v21, %v849_v21  ;;  %v854_v7 = vpack.c.bf16 %v850_v63, %v850_v63  ;;  %v2730_v18 = vpop.permute.xlu1 %2729  ;;  %v865_v28 = vsel %vm194_vm2, %v853_v16, 0 }
 0x16d   :  { %v2717_v53 = vunpack.i.h.bf16 %v2715_v48  ;;  %v2716_v60 = vunpack.i.l.bf16 %v2715_v48  ;;  %v2731_v31 = vunpack.i.l.bf16 %v2730_v18  ;;  %v1131_v45 = vsel %vm1128_vm9, %v2721_v8, %v2722_v34 }
 0x16e   :  { %2581 = vmatmul.mubr.msk.bf16.vlgmr.msra.gmra.mxu0 %vm190_vm4, %v167_v32  ;;  %v871_v4 = vsel %vm194_vm2, %v855_v57, 0  ;;  %v2732_v48 = vunpack.i.h.bf16 %v2730_v18  ;;  %v1133_v49 = vpack.c.bf16 %v1131_v45, %v1131_v45  ;;  %v3218_v45 = vld [vmem:[%s3636_s3 + $0x8] sm:$0xff] }
 0x16f   :  { %685 = vmatpush1.bf16.msra.mxu0 %v624_v38  ;;  %702 = vmatprep.mubr.bf16.mxu0 %v3641_v1  ;;  %v994_v59 = vsel %vm990_vm8, %v2717_v53, %v2711_v56  ;;  %v991_v6 = vsel %vm990_vm8, %v2716_v60, %v2717_v53  ;;  %v992_v17 = vsel %vm990_vm8, %v2712_v12, %v2716_v60 }
 0x170   :  { %2589 = vmatprep.subr.msk.bf16.mxu0 %vm194_vm2, %v738_v39  ;;  %2575 = vmatmul.mubr.msk.bf16.vlgmr.msra.gmra.mxu1 %vm190_vm4, %v333_v5  ;;  %v2725_v61 = vpop.permute.xlu0 %2724  ;;  %v998_v2 = vpack.c.bf16 %v994_v59, %v994_v59  ;;  %v997_v11 = vpack.c.bf16 %v991_v6, %v991_v6  ;;  %v996_v27 = vpack.c.bf16 %v992_v17, %v992_v17  ;;  %v1145_v53 = vsel %vm194_vm2, %v1133_v49, 0 }
 0x171   :  { %502 = vmatpush1.bf16.msra.mxu1 %v476_v42  ;;  %519 = vmatprep.mubr.bf16.mxu1 %v3641_v1  ;;  %v2727_v5 = vunpack.i.h.bf16 %v2725_v61  ;;  %v2726_v14 = vunpack.i.l.bf16 %v2725_v61  ;;  %v1273_v21 = vsel %vm1270_vm10, %v2731_v31, %v2732_v48 }
 0x172   :  { %2583 = vmatprep.subr.msk.bf16.mxu1 %vm194_vm2, %v607_v41  ;;  %v1009_v20 = vsel %vm194_vm2, %v997_v11, 0  ;;  %v2600_v41 = vcombine.low %v169_v37, %v169_v37 }
 0x173   :  { %v1132_v13 = vsel %vm1128_vm9, %v2727_v5, %v2721_v8  ;;  %v1129_v26 = vsel %vm1128_vm9, %v2726_v14, %v2727_v5  ;;  %v1130_v39 = vsel %vm1128_vm9, %v2722_v34, %v2726_v14 }
 0x174   :  { %v2735_v15 = vpop.permute.xlu0 %2734  ;;  %v1136_v19 = vpack.c.bf16 %v1132_v13, %v1132_v13  ;;  %v1135_v33 = vpack.c.bf16 %v1129_v26, %v1129_v26  ;;  %v1134_v44 = vpack.c.bf16 %v1130_v39, %v1130_v39  ;;  %v1140_v46 = vrot.slane %v2600_v41, 2 }
 0x175   :  { %v2737_v24 = vunpack.i.h.bf16 %v2735_v15  ;;  %v2736_v36 = vunpack.i.l.bf16 %v2735_v15 }
 0x176   :  { %2586 = vmatmul.mubr.msk.bf16.vlgmr.msra.gmra.mxu0 %vm190_vm4, %v613_v25  ;;  %v1151_v42 = vsel %vm194_vm2, %v1135_v33, 0 }
 0x177   :  { %810 = vmatpush1.bf16.msra.mxu0 %v749_v52  ;;  %827 = vmatprep.mubr.bf16.mxu0 %v3641_v1  ;;  %v1274_v35 = vsel %vm1270_vm10, %v2737_v24, %v2731_v31  ;;  %v1271_v43 = vsel %vm1270_vm10, %v2736_v36, %v2737_v24  ;;  %v1272_v50 = vsel %vm1270_vm10, %v2732_v48, %v2736_v36 }
 0x178   :  { %2594 = vmatprep.subr.msk.bf16.mxu0 %vm194_vm2, %v856_v51  ;;  %2579 = vmatmul.mubr.msk.bf16.vlgmr.msra.gmra.mxu1 %vm190_vm4, %v167_v32  ;;  %v993_v32 = vsel %vm990_vm8, %v2711_v56, %v2712_v12  ;;  %v1278_v40 = vpack.c.bf16 %v1274_v35, %v1274_v35  ;;  %v1277_v47 = vpack.c.bf16 %v1271_v43, %v1271_v43 }
 0x179   :  { %644 = vmatpush1.bf16.msra.mxu1 %v618_v54  ;;  %661 = vmatprep.mubr.bf16.mxu1 %v3641_v1  ;;  %v995_v38 = vpack.c.bf16 %v993_v32, %v993_v32  ;;  %v1276_v52 = vpack.c.bf16 %v1272_v50, %v1272_v50  ;;  %v170_v54 = vld [vmem:[%s3635_s4 + $0x10] sm:$0x3] }
 0x17a   :  { %2587 = vmatprep.subr.msk.bf16.mxu1 %vm194_vm2, %v736_v55  ;;  %v1289_v51 = vsel %vm194_vm2, %v1277_v47, 0  ;;  %v1275_v55 = vpack.c.bf16 %v1273_v21, %v1273_v21  ;;  %v3228_v47 = vld [vmem:[%s3636_s3 + $0x18] sm:$0xff] }
 0x17c   :  { %v1283_v56 = vsel %vm194_vm2, %v1275_v55, 0 }
 0x17e   :  { %2590 = vmatmul.mubr.msk.bf16.vlgmr.msra.gmra.mxu0 %vm190_vm4, %v168_v23 }
 0x17f   :  { %932 = vmatpush1.bf16.msra.mxu0 %v871_v4  ;;  %949 = vmatprep.mubr.bf16.mxu0 %v3641_v1 }
 0x180   :  { %2598 = vmatprep.subr.msk.bf16.mxu0 %vm194_vm2, %v998_v2  ;;  %2584 = vmatmul.mubr.msk.bf16.vlgmr.msra.gmra.mxu1 %vm190_vm4, %v613_v25  ;;  %v1003_v25 = vsel %vm194_vm2, %v995_v38, 0 }
 0x181   :  { %769 = vmatpush1.bf16.msra.mxu1 %v743_v22  ;;  %786 = vmatprep.mubr.bf16.mxu1 %v3641_v1 }
 0x182   :  { %2592 = vmatprep.subr.msk.bf16.mxu1 %vm194_vm2, %v854_v7 }
 0x186   :  { %2595 = vmatmul.mubr.msk.bf16.vlgmr.msra.gmra.mxu0 %vm190_vm4, %v860_v10 }
 0x187   :  { %1070 = vmatpush1.bf16.msra.mxu0 %v1009_v20  ;;  %1087 = vmatprep.mubr.bf16.mxu0 %v3641_v1 }
 0x188   :  { %2603 = vmatprep.subr.msk.bf16.mxu0 %vm194_vm2, %v1136_v19  ;;  %2588 = vmatmul.mubr.msk.bf16.vlgmr.msra.gmra.mxu1 %vm190_vm4, %v168_v23 }
 0x189   :  { %891 = vmatpush1.bf16.msra.mxu1 %v865_v28  ;;  %908 = vmatprep.mubr.bf16.mxu1 %v3641_v1 }
 0x18a   :  { %2596 = vmatprep.subr.msk.bf16.mxu1 %vm194_vm2, %v996_v27 }
 0x18e   :  { %2599 = vmatmul.mubr.msk.bf16.vlgmr.msra.gmra.mxu0 %vm190_vm4, %v169_v37 }
 0x18f   :  { %1212 = vmatpush1.bf16.msra.mxu0 %v1151_v42  ;;  %1229 = vmatprep.mubr.bf16.mxu0 %v3641_v1 }
 0x190   :  { %2607 = vmatprep.subr.msk.bf16.mxu0 %vm194_vm2, %v1278_v40  ;;  %2593 = vmatmul.mubr.msk.bf16.vlgmr.msra.gmra.mxu1 %vm190_vm4, %v860_v10 }
 0x191   :  { %1029 = vmatpush1.bf16.msra.mxu1 %v1003_v25  ;;  %1046 = vmatprep.mubr.bf16.mxu1 %v3641_v1  ;;  %v3213_v25 = vld [vmem:[%s3636_s3] sm:$0xff] }
 0x192   :  { %2601 = vmatprep.subr.msk.bf16.mxu1 %vm194_vm2, %v1134_v44 }
 0x196   :  { %2604 = vmatmul.mubr.msk.bf16.vlgmr.msra.gmra.mxu0 %vm190_vm4, %v1140_v46 }
 0x197   :  { %1350 = vmatpush1.bf16.msra.mxu0 %v1289_v51  ;;  %1367 = vmatprep.mubr.bf16.mxu0 %v3641_v1 }
 0x198   :  { %2597 = vmatmul.mubr.msk.bf16.vlgmr.msra.gmra.mxu1 %vm190_vm4, %v169_v37  ;;  %v290_v37 = vshrl.u32 %v179_v29, 7 }
 0x199   :  { %1171 = vmatpush1.bf16.msra.mxu1 %v1145_v53  ;;  %1188 = vmatprep.mubr.bf16.mxu1 %v3641_v1 }
 0x19a   :  { %2605 = vmatprep.subr.msk.bf16.mxu1 %vm194_vm2, %v1276_v52  ;;  %v291_v42 = vsub.s32 0, %v290_v37  ;;  %v433_v29 = vsub.s32 1, %v290_v37  ;;  %v571_v48 = vsub.s32 2, %v290_v37  ;;  %v713_v51 = vsub.s32 3, %v290_v37 }
 0x19b   :  { %v960_v21 = vsub.s32 5, %v290_v37 }
 0x19c   :  { %v3235_v52 = vrot.slane %v3213_v25, %v291_v42  ;;  %v3238_v53 = vrot.slane %v3218_v45, %v291_v42 }
 0x19e   :  { %2608 = vmatmul.mubr.msk.bf16.vlgmr.msra.gmra.mxu0 %vm190_vm4, %v170_v54 }
 0x19f   :  { %1535 = vmatprep.mubr.bf16.mxu0 %v3641_v1 }
 0x1a0   :  { %2602 = vmatmul.mubr.msk.bf16.vlgmr.msra.gmra.mxu1 %vm190_vm4, %v1140_v46  ;;  %v3223_v46 = vld [vmem:[%s3636_s3 + $0x10] sm:$0xff] }
 0x1a1   :  { %1309 = vmatpush1.bf16.msra.mxu1 %v1283_v56  ;;  %1326 = vmatprep.mubr.bf16.mxu1 %v3641_v1  ;;  %v3243_v56 = vrot.slane %v3223_v46, %v433_v29 }
 0x1a8   :  { %2606 = vmatmul.mubr.msk.bf16.vlgmr.msra.gmra.mxu1 %vm190_vm4, %v170_v54 }
 0x1a9   :  { %1494 = vmatprep.mubr.bf16.mxu1 %v3641_v1 }
 0x220   :  { %v3163_v57 = vpop.f32.mrf.mxu1 }
 0x222   :  { %v3165_v58 = vpop.f32.mrf.mxu1 }
 0x224   :  { %v245_v59 = vpop.f32.mrf.mxu1 }
 0x225   :  { %v3246_v59 = vrot.slane %v3223_v46, %v291_v42 }
 0x226   :  { %v246_v60 = vpop.f32.mrf.mxu1  ;;  %v3167_v23 = vpop.f32.mrf.mxu0 }
 0x227   :  { %3652 = vst [vmem:[#allocation3_spill] sm:$0xff] %v3246_v59  ;;  %v3249_v60 = vrot.slane %v3228_v47, %v433_v29 }
 0x228   :  { %v3169_v61 = vpop.f32.mrf.mxu1  ;;  %v3171_v62 = vpop.f32.mrf.mxu0 }
 0x22a   :  { %v3173_v63 = vpop.f32.mrf.mxu1  ;;  %v428_v0 = vpop.f32.mrf.mxu0 }
 0x22b   :  { %v3252_v0 = vrot.slane %v3228_v47, %v291_v42  ;;  %v450_v42 = vmul.f32 %v3249_v60, %v3171_v62 }
 0x22c   :  { %v286_v2 = vpop.f32.mrf.mxu1  ;;  %v429_v3 = vpop.f32.mrf.mxu0 }
 0x22d   :  { %3653 = vst [vmem:[#allocation4_spill] sm:$0xff] %v3252_v0  ;;  %v3255_v2 = vrot.slane %v3223_v46, %v571_v48  ;;  %v3258_v3 = vrot.slane %v3213_v25, %v433_v29 }
 0x22e   :  { %v287_v4 = vpop.f32.mrf.mxu1  ;;  %v3175_v5 = vpop.f32.mrf.mxu0 }
 0x22f   :  { %3654 = vst [vmem:[#allocation5_spill] sm:$0xff] %v3255_v2  ;;  %v3261_v4 = vrot.slane %v3228_v47, %v571_v48  ;;  %v587_v62 = vmul.f32 %v3255_v2, %v3175_v5 }
 0x230   :  { %v3177_v6 = vpop.f32.mrf.mxu1  ;;  %v3179_v7 = vpop.f32.mrf.mxu0 }
 0x231   :  { %3655 = vst [vmem:[#allocation6_spill] sm:$0xff] %v3261_v4 }
 0x232   :  { %v3181_v22 = vpop.f32.mrf.mxu1  ;;  %v566_v8 = vpop.f32.mrf.mxu0 }
 0x233   :  { %v1098_v8 = vsub.s32 6, %v290_v37 }
 0x234   :  { %v387_v9 = vpop.f32.mrf.mxu1  ;;  %v567_v10 = vpop.f32.mrf.mxu0 }
 0x236   :  { %v388_v11 = vpop.f32.mrf.mxu1  ;;  %v3183_v12 = vpop.f32.mrf.mxu0 }
 0x237   :  { %v3264_v11 = vrot.slane %v3218_v45, %v433_v29  ;;  %v447_v29 = vmul.f32 %v3258_v3, %v3177_v6  ;;  %v1240_v6 = vsub.s32 7, %v290_v37 }
 0x238   :  { %v3185_v13 = vpop.f32.mrf.mxu1  ;;  %v3187_v14 = vpop.f32.mrf.mxu0 }
 0x23a   :  { %v3189_v15 = vpop.f32.mrf.mxu1  ;;  %v708_v16 = vpop.f32.mrf.mxu0 }
 0x23b   :  { %v3267_v16 = vrot.slane %v3223_v46, %v713_v51 }
 0x23c   :  { %v525_v17 = vpop.f32.mrf.mxu1  ;;  %v709_v18 = vpop.f32.mrf.mxu0 }
 0x23d   :  { %v3270_v17 = vrot.slane %v3213_v25, %v571_v48  ;;  %v3273_v18 = vrot.slane %v3228_v47, %v713_v51 }
 0x23e   :  { %v526_v19 = vpop.f32.mrf.mxu1  ;;  %v3191_v20 = vpop.f32.mrf.mxu0 }
 0x23f   :  { %3656 = vst [vmem:[#allocation7_spill] sm:$0xff] %v3270_v17  ;;  %v3276_v19 = vrot.slane %v3218_v45, %v571_v48  ;;  %v3300_v48 = vrot.slane %v3228_v47, %v960_v21  ;;  %v585_v1 = vmul.f32 %v3270_v17, %v3185_v13  ;;  %v730_v37 = vmul.f32 %v3273_v18, %v3187_v14 }
 0x240   :  { %v3193_v24 = vpop.f32.mrf.mxu1  ;;  %v3195_v26 = vpop.f32.mrf.mxu0 }
 0x241   :  { %v586_v13 = vmul.f32 %v3276_v19, %v3189_v15  ;;  %v3343_v15 = vrot.slane %v3228_v47, %v1240_v6 }
 0x242   :  { %v3197_v27 = vpop.f32.mrf.mxu1  ;;  %v833_v28 = vpop.f32.mrf.mxu0 }
 0x243   :  { %v3279_v28 = vrot.slane %v3213_v25, %v713_v51 }
 0x244   :  { %v667_v31 = vpop.f32.mrf.mxu1  ;;  %v834_v32 = vpop.f32.mrf.mxu0 }
 0x245   :  { %v3282_v31 = vrot.slane %v3218_v45, %v713_v51  ;;  %v3285_v32 = vrot.slane %v3223_v46, %v960_v21  ;;  %v3303_v51 = vrot.slane %v3223_v46, %v1098_v8 }
 0x246   :  { %v668_v33 = vpop.f32.mrf.mxu1  ;;  %v3199_v34 = vpop.f32.mrf.mxu0 }
 0x248   :  { %v3201_v35 = vpop.f32.mrf.mxu1  ;;  %v3203_v36 = vpop.f32.mrf.mxu0 }
 0x24a   :  { %v3206_v38 = vpop.f32.mrf.mxu1  ;;  %v955_v39 = vpop.f32.mrf.mxu0 }
 0x24c   :  { %v792_v40 = vpop.f32.mrf.mxu1  ;;  %v956_v41 = vpop.f32.mrf.mxu0 }
 0x24d   :  { %v449_v40 = vmul.f32 %v3243_v56, %v3167_v23  ;;  %v307_v41 = vmul.f32 %v3246_v59, %v3169_v61  ;;  %v3306_v23 = vrot.slane %v3213_v25, %v960_v21 }
 0x24e   :  { %v793_v43 = vpop.f32.mrf.mxu1  ;;  %v3208_v44 = vpop.f32.mrf.mxu0 }
 0x24f   :  { %v308_v43 = vmul.f32 %v3252_v0, %v3173_v63  ;;  %v588_v63 = vmul.f32 %v3261_v4, %v3179_v7  ;;  %v3322_v0 = vrot.slane %v3218_v45, %v960_v21  ;;  %v453_v59 = vadd.f32 %v449_v40, %v307_v41 }
 0x250   :  { %v3230_v49 = vpop.f32.mrf.mxu1  ;;  %v3232_v50 = vpop.f32.mrf.mxu0  ;;  %v729_v4 = vmul.f32 %v3267_v16, %v3183_v12  ;;  %v727_v21 = vmul.f32 %v3279_v28, %v3193_v24  ;;  %v3338_v12 = vrot.slane %v3213_v25, %v1098_v8 }
 0x251   :  { %v454_v7 = vadd.f32 %v450_v42, %v308_v43  ;;  %v591_v40 = vadd.f32 %v587_v62, %v453_v59  ;;  %v3335_v42 = vrot.slane %v3223_v46, %v1240_v6  ;;  %v977_v59 = vmul.f32 %v3300_v48, %v3203_v36 }
 0x252   :  { %v3240_v54 = vpop.f32.mrf.mxu1  ;;  %v1093_v55 = vpop.f32.mrf.mxu0  ;;  %v3348_v46 = vrot.slane %v3218_v45, %v1098_v8 }
 0x253   :  { %v592_v41 = vadd.f32 %v588_v63, %v454_v7 }
 0x254   :  { %v914_v9 = vpop.f32.mrf.mxu1  ;;  %v1094_v10 = vpop.f32.mrf.mxu0 }
 0x255   :  { %v3313_v9 = vrot.slane %v3228_v47, %v1098_v8  ;;  %v305_v10 = vmul.f32 %v3235_v52, %v3163_v57  ;;  %v306_v57 = vmul.f32 %v3238_v53, %v3165_v58  ;;  %v728_v58 = vmul.f32 %v3282_v31, %v3197_v27 }
 0x256   :  { %v915_v33 = vpop.f32.mrf.mxu1  ;;  %v3287_v39 = vpop.f32.mrf.mxu0  ;;  %v974_v27 = vmul.f32 %v3306_v23, %v3230_v49  ;;  %v3359_v8 = vrot.slane %v3213_v25, %v1240_v6  ;;  %v975_v49 = vmul.f32 %v3322_v0, %v3240_v54 }
 0x257   :  { %v448_v33 = vmul.f32 %v3264_v11, %v3181_v22  ;;  %v451_v22 = vadd.f32 %v447_v29, %v305_v10  ;;  %v734_v10 = vadd.f32 %v730_v37, %v592_v41  ;;  %v1115_v36 = vmul.f32 %v3313_v9, %v3232_v50 }
 0x258   :  { %v1048_v55 = vpop.f32.mrf.mxu1  ;;  %v1233_v61 = vpop.f32.mrf.mxu0  ;;  %v1256_v54 = vmul.f32 %v3335_v42, %v3287_v39  ;;  %v3390_v39 = vld [vmem:[%s3636_s3 + $0x20] ss:$0 sm:$0xff] }
 0x259   :  { %v452_v14 = vadd.f32 %v448_v33, %v306_v57  ;;  %v589_v43 = vadd.f32 %v585_v1, %v451_v22  ;;  %v976_v1 = vmul.f32 %v3285_v32, %v3199_v34  ;;  %v1114_v34 = vmul.f32 %v3303_v51, %v3208_v44  ;;  %3659 = vst [vmem:[#allocation10_spill] sm:$0xff] %v3390_v39 }
 0x25a   :  { %v1050_v5 = vpop.f32.mrf.mxu1  ;;  %v1235_v2 = vpop.f32.mrf.mxu0  ;;  %v1112_v25 = vmul.f32 %v3338_v12, %v1048_v55 }
 0x25b   :  { %v590_v62 = vadd.f32 %v586_v13, %v452_v14  ;;  %v731_v63 = vadd.f32 %v727_v21, %v589_v43  ;;  %v1257_v13 = vmul.f32 %v3343_v15, %v1233_v61  ;;  %v1113_v61 = vmul.f32 %v3348_v46, %v1050_v5 }
 0x25c   :  { %v1052_v17 = vpop.f32.mrf.mxu1  ;;  %v1236_v2 = vpop.f32.mrf.mxu0 }
 0x25d   :  { %v733_v17 = vadd.f32 %v729_v4, %v591_v40  ;;  %v839_v4 = vadd.f32 %v3195_v26, %v734_v10  ;;  %v836_v37 = vadd.f32 %v3201_v35, %v731_v63  ;;  %v732_v57 = vadd.f32 %v728_v58, %v590_v62  ;;  %v3382_v40 = vld [vmem:[%s3636_s3 + $0x30] ss:$0 sm:$0xff] }
 0x25e   :  { %v1053_v29 = vpop.f32.mrf.mxu1  ;;  %v1369_v24 = vpop.f32.mrf.mxu0  ;;  %v3374_v35 = vrot.slane %v3218_v45, %v1240_v6  ;;  %3658 = vst [vmem:[#allocation9_spill] sm:$0xff] %v3382_v40 }
 0x25f   :  { %v838_v7 = vadd.f32 %v3191_v20, %v733_v17  ;;  %v3369_v20 = vld [vmem:[%s3636_s3 + $0x38] ss:$0 sm:$0xff]  ;;  %v981_v50 = vadd.f32 %v977_v59, %v839_v4  ;;  %v837_v44 = vadd.f32 %v3206_v38, %v732_v57  ;;  %v978_v2 = vadd.f32 %v974_v27, %v836_v37  ;;  %v1404_v57 = vpop.permute.xlu1 %1403 }
 0x260   :  { %v1190_v47 = vpop.f32.mrf.mxu1  ;;  %v1371_v33 = vpop.f32.mrf.mxu0  ;;  %3657 = vst [vmem:[#allocation8_spill] sm:$0xff] %v3369_v20  ;;  %v1394_v10 = vmul.f32 %v3382_v40, %v1369_v24 }
 0x261   :  { %v980_v21 = vadd.f32 %v976_v1, %v838_v7  ;;  %v1119_v55 = vadd.f32 %v1115_v36, %v981_v50  ;;  %v1254_v45 = vmul.f32 %v3359_v8, %v1190_v47  ;;  %v1395_v6 = vmul.f32 %v3369_v20, %v1371_v33  ;;  %v3397_v1 = vld [vmem:[%s3636_s3 + $0x28] ss:$0 sm:$0xff]  ;;  %v1414_v50 = vpop.permute.xlu0 %1413  ;;  %v3662_v20 = vld [vmem:[#allocation3_spill] sm:$0xff] }
 0x262   :  { %v1192_v26 = vpop.f32.mrf.mxu1  ;;  %v1373_v22 = vpop.f32.mrf.mxu0  ;;  %v979_v38 = vadd.f32 %v975_v49, %v837_v44  ;;  %v1116_v29 = vadd.f32 %v1112_v25, %v978_v2  ;;  %3660 = vst [vmem:[#allocation11_spill] sm:$0xff] %v3397_v1 }
 0x263   :  { %v1118_v43 = vadd.f32 %v1114_v34, %v980_v21  ;;  %v1261_v17 = vadd.f32 %v1257_v13, %v1119_v55  ;;  %v1255_v59 = vmul.f32 %v3374_v35, %v1192_v26 }
 0x264   :  { %v1194_v41 = vpop.f32.mrf.mxu1  ;;  %v1374_v14 = vpop.f32.mrf.mxu0  ;;  %v1117_v63 = vadd.f32 %v1113_v61, %v979_v38  ;;  %v1258_v27 = vadd.f32 %v1254_v45, %v1116_v29  ;;  %v2520_v38 = vld [vmem:[%s3637_s8] sm:$0xf] }
 0x265   :  { %v1260_v62 = vadd.f32 %v1256_v54, %v1118_v43  ;;  %v1399_v47 = vadd.f32 %v1395_v6, %v1261_v17 }
 0x266   :  { %v1195_v58 = vpop.f32.mrf.mxu1  ;;  %v1259_v36 = vadd.f32 %v1255_v59, %v1117_v63 }
 0x267   :  { %v1398_v4 = vadd.f32 %v1394_v10, %v1260_v62  ;;  %v1409_v49 = vmul.f32 %v1404_v57, %v1399_v47  ;;  %v2530_v58 = vld [vmem:[%s3638_s9] sm:$0xf] }
 0x268   :  { %v1328_v5 = vpop.f32.mrf.mxu1 }
 0x269   :  { %v1392_v33 = vmul.f32 %v3390_v39, %v1328_v5  ;;  %v1408_v13 = vmul.f32 %v1404_v57, %v1398_v4  ;;  %v1419_v2 = vadd.f32 %v1414_v50, %v1409_v49  ;;  %v3665_v39 = vld [vmem:[#allocation4_spill] sm:$0xff] }
 0x26a   :  { %v1330_v7 = vpop.f32.mrf.mxu1 }
 0x26b   :  { %v1396_v37 = vadd.f32 %v1392_v33, %v1258_v27  ;;  %v1393_v24 = vmul.f32 %v3397_v1, %v1330_v7  ;;  %v1418_v41 = vadd.f32 %v1414_v50, %v1408_v13  ;;  %v3405_v61 = vmax.f32 %v1419_v2, 0.0 }
 0x26c   :  { %v1332_v34 = vpop.f32.mrf.mxu1 }
 0x26d   :  { %v1406_v26 = vmul.f32 %v1404_v57, %v1396_v37  ;;  %v1397_v22 = vadd.f32 %v1393_v24, %v1259_v36  ;;  %v3409_v6 = vmax.f32 %v1418_v41, 0.0 }
 0x26e   :  { %v1333_v25 = vpop.f32.mrf.mxu1 }
 0x26f   :  { %v1416_v21 = vadd.f32 %v1414_v50, %v1406_v26  ;;  %v1407_v44 = vmul.f32 %v1404_v57, %v1397_v22  ;;  %v2745_v43 = vpack.i.bf16 %v3405_v61, %v3409_v6 }
 0x271   :  { %v1417_v54 = vadd.f32 %v1414_v50, %v1407_v44  ;;  %v3401_v14 = vmax.f32 %v1416_v21, 0.0 }
 0x273   :  { %v3403_v55 = vmax.f32 %v1417_v54, 0.0 }
 0x275   :  { %v2750_v45 = vpack.i.bf16 %v3403_v55, %v3401_v14 }
 0x277   :  { %2751 = vrot.lane.b32.xlu0 %v2750_v45, %s2844_s1  ;;  %2741 = vrot.lane.b32.xlu1 %v2750_v45, %s2843_s0 }
 0x27b   :  { %2761 = vrot.lane.b32.xlu0 %v2750_v45, %s2845_s2  ;;  %2746 = vrot.lane.b32.xlu1 %v2745_v43, %s2843_s0 }
 0x27f   :  { %2771 = vrot.lane.b32.xlu0 %v2750_v45, %s2846_s15  ;;  %2756 = vrot.lane.b32.xlu1 %v2745_v43, %s2844_s1 }
 0x283   :  { %2781 = vrot.lane.b32.xlu0 %v2750_v45, %s2847_s16  ;;  %2766 = vrot.lane.b32.xlu1 %v2745_v43, %s2845_s2 }
 0x287   :  { %2791 = vrot.lane.b32.xlu0 %v2750_v45, %s2848_s17  ;;  %2776 = vrot.lane.b32.xlu1 %v2745_v43, %s2846_s15 }
 0x28b   :  { %2801 = vrot.lane.b32.xlu0 %v2750_v45, %s2849_s18  ;;  %2786 = vrot.lane.b32.xlu1 %v2745_v43, %s2847_s16 }
 0x28f   :  { %2811 = vrot.lane.b32.xlu0 %v2750_v45, %s2850_s19  ;;  %2796 = vrot.lane.b32.xlu1 %v2745_v43, %s2848_s17 }
 0x293   :  { %2523 = vperm.xlu0 %2739, %v2520_v38   ;;  %2806 = vrot.lane.b32.xlu1 %v2745_v43, %s2849_s18  ;;  %v1424_v38 = vld [vmem:[%s3639_s7] sm:$0xf] }
 0x297   :  { %2816 = vrot.lane.b32.xlu1 %v2745_v43, %s2850_s19 }
 0x29b   :  { %2533 = vperm.xlu1 %2738, %v2530_v58  }
 0x2e9   :  { %v2752_v29 = vpop.permute.xlu0 %2751  ;;  %v2742_v17 = vpop.permute.xlu1 %2741 }
 0x2ea   :  { %v2744_v10 = vunpack.i.h.bf16 %v2742_v17  ;;  %v2743_v59 = vunpack.i.l.bf16 %v2742_v17  ;;  %v2754_v62 = vunpack.i.h.bf16 %v2752_v29  ;;  %v2753_v5 = vunpack.i.l.bf16 %v2752_v29 }
 0x2ec   :  { %v1439_v63 = vsel %vm181_vm1, %v2743_v59, %v2744_v10  ;;  %v1562_v36 = vsel %vm321_vm3, %v2753_v5, %v2754_v62 }
 0x2ed   :  { %v1442_v27 = vpack.c.bf16 %v1439_v63, %v1439_v63  ;;  %v2762_v47 = vpop.permute.xlu0 %2761  ;;  %v2747_v33 = vpop.permute.xlu1 %2746  ;;  %v1565_v44 = vpack.c.bf16 %v1562_v36, %v1562_v36 }
 0x2ee   :  { %v2749_v7 = vunpack.i.h.bf16 %v2747_v33  ;;  %v2748_v4 = vunpack.i.l.bf16 %v2747_v33  ;;  %v2764_v37 = vunpack.i.h.bf16 %v2762_v47  ;;  %v2763_v24 = vunpack.i.l.bf16 %v2762_v47 }
 0x2ef   :  { %2613 = vmatprep.subr.msk.bf16.mxu1 %vm1449_vm11, %v1442_v27  ;;  %v2617_v47 = vcombine.low %v1424_v38, %v1424_v38 }
 0x2f0   :  { %v1437_v57 = vsel %vm181_vm1, %v2748_v4, %v2749_v7  ;;  %v1440_v34 = vsel %vm181_vm1, %v2749_v7, %v2743_v59  ;;  %v1438_v49 = vsel %vm181_vm1, %v2744_v10, %v2748_v4  ;;  %v1687_v41 = vsel %vm463_vm5, %v2763_v24, %v2764_v37 }
 0x2f1   :  { %v1444_v26 = vpack.c.bf16 %v1437_v57, %v1437_v57  ;;  %v2757_v22 = vpop.permute.xlu1 %2756  ;;  %v1441_v50 = vpack.c.bf16 %v1440_v34, %v1440_v34  ;;  %v1443_v25 = vpack.c.bf16 %v1438_v49, %v1438_v49  ;;  %v2772_v45 = vpop.permute.xlu0 %2771  ;;  %v1690_v33 = vpack.c.bf16 %v1687_v41, %v1687_v41 }
 0x2f2   :  { %v2759_v13 = vunpack.i.h.bf16 %v2757_v22  ;;  %v2758_v21 = vunpack.i.l.bf16 %v2757_v22  ;;  %v2774_v7 = vunpack.i.h.bf16 %v2772_v45  ;;  %v2773_v36 = vunpack.i.l.bf16 %v2772_v45 }
 0x2f3   :  { %2615 = vmatprep.subr.msk.bf16.mxu0 %vm1449_vm11, %v1444_v26  ;;  %v1451_v2 = vsel %vm1449_vm11, %v1441_v50, 0  ;;  %v1457_v54 = vsel %vm1449_vm11, %v1443_v25, 0  ;;  %v3661_v50 = vmov 0  }
 0x2f4   :  { %v1560_v43 = vsel %vm321_vm3, %v2758_v21, %v2759_v13  ;;  %1477 = vmatpush1.bf16.msra.mxu1 %v1451_v2  ;;  %1518 = vmatpush1.bf16.msra.mxu0 %v1457_v54  ;;  %v1563_v58 = vsel %vm321_vm3, %v2759_v13, %v2753_v5  ;;  %v1561_v59 = vsel %vm321_vm3, %v2754_v62, %v2758_v21  ;;  %v1571_v21 = vrot.slane %v2617_v47, 2 }
 0x2f5   :  { %v1567_v29 = vpack.c.bf16 %v1560_v43, %v1560_v43  ;;  %v2767_v17 = vpop.permute.xlu1 %2766  ;;  %2618 = vmatprep.subr.msk.bf16.mxu1 %vm1449_vm11, %v1565_v44  ;;  %v1564_v10 = vpack.c.bf16 %v1563_v58, %v1563_v58  ;;  %v1566_v5 = vpack.c.bf16 %v1561_v59, %v1561_v59 }
 0x2f6   :  { %v2769_v63 = vunpack.i.h.bf16 %v2767_v17  ;;  %v2768_v27 = vunpack.i.l.bf16 %v2767_v17 }
 0x2f7   :  { %2614 = vmatmul.mubr.msk.bf16.vlgmr.msra.gmra.mxu1 %vm1445_vm12, %v1424_v38  ;;  %2616 = vmatmul.mubr.msk.bf16.vlgmr.msra.gmra.mxu0 %vm1445_vm12, %v1424_v38  ;;  %v1576_v4 = vsel %vm1449_vm11, %v1564_v10, 0  ;;  %v1582_v26 = vsel %vm1449_vm11, %v1566_v5, 0  ;;  %v1425_v10 = vld [vmem:[%s3639_s7 + $0x4] sm:$0xf] }
 0x2f8   :  { %v1685_v57 = vsel %vm463_vm5, %v2768_v27, %v2769_v63  ;;  %2620 = vmatprep.subr.msk.bf16.mxu0 %vm1449_vm11, %v1567_v29  ;;  %1602 = vmatpush1.bf16.msra.mxu1 %v1576_v4  ;;  %v1688_v62 = vsel %vm463_vm5, %v2769_v63, %v2763_v24  ;;  %v1686_v34 = vsel %vm463_vm5, %v2764_v37, %v2768_v27  ;;  %v2782_v27 = vpop.permute.xlu0 %2781 }
 0x2f9   :  { %v1692_v49 = vpack.c.bf16 %v1685_v57, %v1685_v57  ;;  %v2777_v22 = vpop.permute.xlu1 %2776  ;;  %2622 = vmatprep.subr.msk.bf16.mxu1 %vm1449_vm11, %v1690_v33  ;;  %1619 = vmatprep.mubr.bf16.mxu1 %v3661_v50  ;;  %v1689_v24 = vpack.c.bf16 %v1688_v62, %v1688_v62  ;;  %v1691_v44 = vpack.c.bf16 %v1686_v34, %v1686_v34  ;;  %v2783_v57 = vunpack.i.l.bf16 %v2782_v27 }
 0x2fa   :  { %1643 = vmatpush1.bf16.msra.mxu0 %v1582_v26  ;;  %v2779_v25 = vunpack.i.h.bf16 %v2777_v22  ;;  %v2778_v13 = vunpack.i.l.bf16 %v2777_v22  ;;  %1660 = vmatprep.mubr.bf16.mxu0 %v3661_v50  ;;  %v1808_v37 = vsel %vm601_vm6, %v2773_v36, %v2774_v7  ;;  %v1926_v63 = vpack.c.bf16 %v3405_v61, %v3405_v61 }
 0x2fb   :  { %2624 = vmatprep.subr.msk.bf16.mxu0 %vm1449_vm11, %v1692_v49  ;;  %v1811_v41 = vpack.c.bf16 %v1808_v37, %v1808_v37  ;;  %v1697_v45 = vsel %vm1449_vm11, %v1689_v24, 0  ;;  %v1703_v43 = vsel %vm1449_vm11, %v1691_v44, 0  ;;  %v2626_v47 = vcombine.low %v1425_v10, %v1425_v10 }
 0x2fc   :  { %v1806_v2 = vsel %vm601_vm6, %v2778_v13, %v2779_v25  ;;  %v1809_v38 = vsel %vm601_vm6, %v2779_v25, %v2773_v36  ;;  %v1807_v58 = vsel %vm601_vm6, %v2774_v7, %v2778_v13  ;;  %v1924_v4 = vpack.c.bf16 %v3403_v55, %v3403_v55  ;;  %v2792_v25 = vpop.permute.xlu0 %2791 }
 0x2fd   :  { %v1813_v54 = vpack.c.bf16 %v1806_v2, %v1806_v2  ;;  %v1810_v29 = vpack.c.bf16 %v1809_v38, %v1809_v38  ;;  %v1812_v17 = vpack.c.bf16 %v1807_v58, %v1807_v58  ;;  %v2787_v59 = vpop.permute.xlu1 %2786  ;;  %v2784_v61 = vunpack.i.h.bf16 %v2782_v27 }
 0x2fe   :  { %v2789_v5 = vunpack.i.h.bf16 %v2787_v59  ;;  %v2788_v36 = vunpack.i.l.bf16 %v2787_v59  ;;  %v1817_v62 = vrot.slane %v2626_v47, 2  ;;  %v1923_v34 = vpack.c.bf16 %v3401_v14, %v3401_v14 }
 0x2ff   :  { %2619 = vmatmul.mubr.msk.bf16.vlgmr.msra.gmra.mxu1 %vm1445_vm12, %v1571_v21  ;;  %2621 = vmatmul.mubr.msk.bf16.vlgmr.msra.gmra.mxu0 %vm1445_vm12, %v1571_v21  ;;  %v1822_v33 = vsel %vm1449_vm11, %v1810_v29, 0  ;;  %v1828_v7 = vsel %vm1449_vm11, %v1812_v17, 0  ;;  %v1925_v55 = vpack.c.bf16 %v3409_v6, %v3409_v6  ;;  %v2038_v37 = vsel %vm848_vm7, %v2783_v57, %v2784_v61  ;;  %v1426_v29 = vld [vmem:[%s3639_s7 + $0x8] sm:$0xf] }
 0x300   :  { %1723 = vmatpush1.bf16.msra.mxu1 %v1697_v45  ;;  %1764 = vmatpush1.bf16.msra.mxu0 %v1703_v43  ;;  %v2039_v49 = vsel %vm848_vm7, %v2789_v5, %v2783_v57  ;;  %v2037_v26 = vsel %vm848_vm7, %v2784_v61, %v2788_v36  ;;  %v1931_v24 = vsel %vm1449_vm11, %v1923_v34, 0  ;;  %v2036_v2 = vsel %vm848_vm7, %v2788_v36, %v2789_v5  ;;  %v2802_v59 = vpop.permute.xlu0 %2801 }
 0x301   :  { %2627 = vmatprep.subr.msk.bf16.mxu1 %vm1449_vm11, %v1811_v41  ;;  %2629 = vmatprep.subr.msk.bf16.mxu0 %vm1449_vm11, %v1813_v54  ;;  %v2797_v22 = vpop.permute.xlu1 %2796  ;;  %v2043_v13 = vpack.c.bf16 %v2039_v49, %v2039_v49  ;;  %v2041_v21 = vpack.c.bf16 %v2037_v26, %v2037_v26  ;;  %v1937_v14 = vsel %vm1449_vm11, %v1925_v55, 0  ;;  %v2794_v54 = vunpack.i.h.bf16 %v2792_v25 }
 0x302   :  { %1740 = vmatprep.mubr.bf16.mxu1 %v3661_v50  ;;  %1781 = vmatprep.mubr.bf16.mxu0 %v3661_v50  ;;  %v2799_v44 = vunpack.i.h.bf16 %v2797_v22  ;;  %v2798_v6 = vunpack.i.l.bf16 %v2797_v22  ;;  %v2793_v41 = vunpack.i.l.bf16 %v2792_v25  ;;  %v2040_v45 = vpack.c.bf16 %v2038_v37, %v2038_v37 }
 0x303   :  { %v2042_v43 = vpack.c.bf16 %v2036_v2, %v2036_v2  ;;  %v2804_v61 = vunpack.i.h.bf16 %v2802_v59  ;;  %v2803_v57 = vunpack.i.l.bf16 %v2802_v59 }
 0x304   :  { %v2164_v38 = vsel %vm990_vm8, %v2799_v44, %v2793_v41  ;;  %v2162_v58 = vsel %vm990_vm8, %v2794_v54, %v2798_v6  ;;  %v2052_v47 = vsel %vm1449_vm11, %v2040_v45, 0  ;;  %v2163_v5 = vsel %vm990_vm8, %v2793_v41, %v2794_v54  ;;  %v2812_v25 = vpop.permute.xlu0 %2811 }
 0x305   :  { %v2807_v17 = vpop.permute.xlu1 %2806  ;;  %v2166_v27 = vpack.c.bf16 %v2162_v58, %v2162_v58  ;;  %v2161_v36 = vsel %vm990_vm8, %v2798_v6, %v2799_v44  ;;  %v2165_v34 = vpack.c.bf16 %v2163_v5, %v2163_v5  ;;  %v2284_v37 = vsel %vm1128_vm9, %v2803_v57, %v2804_v61 }
 0x306   :  { %v2167_v55 = vpack.c.bf16 %v2161_v36, %v2161_v36  ;;  %v2814_v54 = vunpack.i.h.bf16 %v2812_v25  ;;  %v2813_v41 = vunpack.i.l.bf16 %v2812_v25  ;;  %v2286_v45 = vpack.c.bf16 %v2284_v37, %v2284_v37 }
 0x307   :  { %2623 = vmatmul.mubr.msk.bf16.vlgmr.msra.gmra.mxu1 %vm1445_vm12, %v1425_v10  ;;  %2625 = vmatmul.mubr.msk.bf16.vlgmr.msra.gmra.mxu0 %vm1445_vm12, %v1425_v10  ;;  %v2635_v10 = vcombine.low %v1426_v29, %v1426_v29 }
 0x308   :  { %1848 = vmatpush1.bf16.msra.mxu1 %v1822_v33  ;;  %1889 = vmatpush1.bf16.msra.mxu0 %v1828_v7  ;;  %v2058_v33 = vsel %vm1449_vm11, %v2042_v43, 0  ;;  %v2809_v7 = vunpack.i.h.bf16 %v2807_v17 }
 0x309   :  { %2631 = vmatprep.subr.msk.bf16.mxu1 %vm1449_vm11, %v1924_v4  ;;  %2633 = vmatprep.subr.msk.bf16.mxu0 %vm1449_vm11, %v1926_v63  ;;  %v2168_v63 = vpack.c.bf16 %v2164_v38, %v2164_v38  ;;  %v2808_v4 = vunpack.i.l.bf16 %v2807_v17  ;;  %v2817_v22 = vpop.permute.xlu1 %2816 }
 0x30a   :  { %1865 = vmatprep.mubr.bf16.mxu1 %v3661_v50  ;;  %1906 = vmatprep.mubr.bf16.mxu0 %v3661_v50  ;;  %v2285_v49 = vsel %vm1128_vm9, %v2809_v7, %v2803_v57  ;;  %v2819_v44 = vunpack.i.h.bf16 %v2817_v22  ;;  %v2818_v6 = vunpack.i.l.bf16 %v2817_v22 }
 0x30b   :  { %v2283_v26 = vsel %vm1128_vm9, %v2804_v61, %v2808_v4  ;;  %v2282_v2 = vsel %vm1128_vm9, %v2808_v4, %v2809_v7  ;;  %v1428_v61 = vld [vmem:[%s3639_s7 + $0x10] sm:$0x3] }
 0x30c   :  { %v2288_v43 = vpack.c.bf16 %v2282_v2, %v2282_v2  ;;  %v2410_v38 = vsel %vm1270_vm10, %v2819_v44, %v2813_v41  ;;  %v2408_v58 = vsel %vm1270_vm10, %v2814_v54, %v2818_v6 }
 0x30d   :  { %v2412_v59 = vpack.c.bf16 %v2408_v58, %v2408_v58 }
 0x30f   :  { %2628 = vmatmul.mubr.msk.bf16.vlgmr.msra.gmra.mxu1 %vm1445_vm12, %v1817_v62  ;;  %2630 = vmatmul.mubr.msk.bf16.vlgmr.msra.gmra.mxu0 %vm1445_vm12, %v1817_v62  ;;  %v2047_v62 = vrot.slane %v2635_v10, 2  ;;  %v2414_v10 = vpack.c.bf16 %v2410_v38, %v2410_v38 }
 0x310   :  { %1957 = vmatpush1.bf16.msra.mxu1 %v1931_v24  ;;  %1998 = vmatpush1.bf16.msra.mxu0 %v1937_v14  ;;  %v2173_v24 = vsel %vm1449_vm11, %v2165_v34, 0  ;;  %v2179_v14 = vsel %vm1449_vm11, %v2167_v55, 0 }
 0x311   :  { %2636 = vmatprep.subr.msk.bf16.mxu1 %vm1449_vm11, %v2041_v21  ;;  %2638 = vmatprep.subr.msk.bf16.mxu0 %vm1449_vm11, %v2043_v13  ;;  %v2289_v13 = vpack.c.bf16 %v2285_v49, %v2285_v49  ;;  %v2287_v21 = vpack.c.bf16 %v2283_v26, %v2283_v26 }
 0x312   :  { %1974 = vmatprep.mubr.bf16.mxu1 %v3661_v50  ;;  %2015 = vmatprep.mubr.bf16.mxu0 %v3661_v50 }
 0x317   :  { %2632 = vmatmul.mubr.msk.bf16.vlgmr.msra.gmra.mxu1 %vm1445_vm12, %v1426_v29  ;;  %2634 = vmatmul.mubr.msk.bf16.vlgmr.msra.gmra.mxu0 %vm1445_vm12, %v1426_v29  ;;  %v1427_v29 = vld [vmem:[%s3639_s7 + $0xc] sm:$0xf] }
 0x318   :  { %2078 = vmatpush1.bf16.msra.mxu1 %v2052_v47  ;;  %2119 = vmatpush1.bf16.msra.mxu0 %v2058_v33  ;;  %v2644_v17 = vcombine.low %v1427_v29, %v1427_v29  ;;  %v2409_v47 = vsel %vm1270_vm10, %v2813_v41, %v2814_v54  ;;  %v2407_v33 = vsel %vm1270_vm10, %v2818_v6, %v2819_v44 }
 0x319   :  { %2640 = vmatprep.subr.msk.bf16.mxu1 %vm1449_vm11, %v2166_v27  ;;  %2642 = vmatprep.subr.msk.bf16.mxu0 %vm1449_vm11, %v2168_v63  ;;  %v2298_v63 = vsel %vm1449_vm11, %v2286_v45, 0  ;;  %v2304_v27 = vsel %vm1449_vm11, %v2288_v43, 0  ;;  %v2411_v4 = vpack.c.bf16 %v2409_v47, %v2409_v47  ;;  %v2413_v5 = vpack.c.bf16 %v2407_v33, %v2407_v33 }
 0x31a   :  { %2095 = vmatprep.mubr.bf16.mxu1 %v3661_v50  ;;  %2136 = vmatprep.mubr.bf16.mxu0 %v3661_v50  ;;  %v2293_v7 = vrot.slane %v2644_v17, 2 }
 0x31b   :  { %v2419_v36 = vsel %vm1449_vm11, %v2411_v4, 0  ;;  %v2425_v30 = vsel %vm1449_vm11, %v2413_v5, 0 }
 0x31f   :  { %2637 = vmatmul.mubr.msk.bf16.vlgmr.msra.gmra.mxu1 %vm1445_vm12, %v2047_v62  ;;  %2639 = vmatmul.mubr.msk.bf16.vlgmr.msra.gmra.mxu0 %vm1445_vm12, %v2047_v62 }
 0x320   :  { %2199 = vmatpush1.bf16.msra.mxu1 %v2173_v24  ;;  %2240 = vmatpush1.bf16.msra.mxu0 %v2179_v14 }
 0x321   :  { %2645 = vmatprep.subr.msk.bf16.mxu1 %vm1449_vm11, %v2287_v21  ;;  %2647 = vmatprep.subr.msk.bf16.mxu0 %vm1449_vm11, %v2289_v13 }
 0x322   :  { %2216 = vmatprep.mubr.bf16.mxu1 %v3661_v50  ;;  %2257 = vmatprep.mubr.bf16.mxu0 %v3661_v50 }
 0x327   :  { %2641 = vmatmul.mubr.msk.bf16.vlgmr.msra.gmra.mxu1 %vm1445_vm12, %v1427_v29  ;;  %2643 = vmatmul.mubr.msk.bf16.vlgmr.msra.gmra.mxu0 %vm1445_vm12, %v1427_v29 }
 0x328   :  { %2324 = vmatpush1.bf16.msra.mxu1 %v2298_v63  ;;  %2365 = vmatpush1.bf16.msra.mxu0 %v2304_v27 }
 0x329   :  { %2649 = vmatprep.subr.msk.bf16.mxu1 %vm1449_vm11, %v2412_v59  ;;  %2651 = vmatprep.subr.msk.bf16.mxu0 %vm1449_vm11, %v2414_v10 }
 0x32a   :  { %2341 = vmatprep.mubr.bf16.mxu1 %v3661_v50  ;;  %2382 = vmatprep.mubr.bf16.mxu0 %v3661_v50 }
 0x32f   :  { %2646 = vmatmul.mubr.msk.bf16.vlgmr.msra.gmra.mxu1 %vm1445_vm12, %v2293_v7  ;;  %2648 = vmatmul.mubr.msk.bf16.vlgmr.msra.gmra.mxu0 %vm1445_vm12, %v2293_v7 }
 0x330   :  { %2445 = vmatpush1.bf16.msra.mxu1 %v2419_v36  ;;  %2486 = vmatpush1.bf16.msra.mxu0 %v2425_v30 }
 0x331   :  { %2462 = vmatprep.mubr.bf16.mxu1 %v3661_v50  ;;  %2503 = vmatprep.mubr.bf16.mxu0 %v3661_v50 }
 0x337   :  { %2650 = vmatmul.mubr.msk.bf16.vlgmr.msra.gmra.mxu1 %vm1445_vm12, %v1428_v61  ;;  %2652 = vmatmul.mubr.msk.bf16.vlgmr.msra.gmra.mxu0 %vm1445_vm12, %v1428_v61 }
 0x3b7   :  { %v1496_v57 = vpop.f32.mrf.mxu1  ;;  %v1537_v62 = vpop.f32.mrf.mxu0 }
 0x3b8   :  { %v1546_v1 = vmul.f32 %v1537_v62, %v3662_v20 }
 0x3b9   :  { %v1498_v34 = vpop.f32.mrf.mxu1  ;;  %v1539_v55 = vpop.f32.mrf.mxu0 }
 0x3ba   :  { %v1545_v40 = vmul.f32 %v1498_v34, %v3238_v53 }
 0x3bb   :  { %v1500_v49 = vpop.f32.mrf.mxu1  ;;  %v1541_v26 = vpop.f32.mrf.mxu0 }
 0x3bd   :  { %v1501_v22 = vpop.f32.mrf.mxu1  ;;  %v1542_v25 = vpop.f32.mrf.mxu0 }
 0x3bf   :  { %v1621_v13 = vpop.f32.mrf.mxu1  ;;  %v1662_v21 = vpop.f32.mrf.mxu0 }
 0x3c1   :  { %v1623_v24 = vpop.f32.mrf.mxu1  ;;  %v1664_v50 = vpop.f32.mrf.mxu0 }
 0x3c3   :  { %v1625_v14 = vpop.f32.mrf.mxu1  ;;  %v1666_v44 = vpop.f32.mrf.mxu0 }
 0x3c5   :  { %v1626_v6 = vpop.f32.mrf.mxu1  ;;  %v1667_v37 = vpop.f32.mrf.mxu0 }
 0x3c7   :  { %v1742_v2 = vpop.f32.mrf.mxu1  ;;  %v1783_v54 = vpop.f32.mrf.mxu0 }
 0x3c9   :  { %v1744_v41 = vpop.f32.mrf.mxu1  ;;  %v1785_v45 = vpop.f32.mrf.mxu0 }
 0x3cb   :  { %v1746_v43 = vpop.f32.mrf.mxu1  ;;  %v1787_v38 = vpop.f32.mrf.mxu0 }
 0x3cd   :  { %v1747_v58 = vpop.f32.mrf.mxu1  ;;  %v1788_v29 = vpop.f32.mrf.mxu0 }
 0x3cf   :  { %v1867_v17 = vpop.f32.mrf.mxu1  ;;  %v1908_v10 = vpop.f32.mrf.mxu0 }
 0x3d0   :  { %v1917_v20 = vmul.f32 %v1908_v10, %v3267_v16 }
 0x3d1   :  { %v1869_v59 = vpop.f32.mrf.mxu1  ;;  %v1910_v63 = vpop.f32.mrf.mxu0 }
 0x3d2   :  { %v1918_v53 = vmul.f32 %v1910_v63, %v3273_v18 }
 0x3d3   :  { %v1871_v27 = vpop.f32.mrf.mxu1  ;;  %v1912_v47 = vpop.f32.mrf.mxu0 }
 0x3d4   :  { %v1669_v47 = vmul.f32 %v1621_v13, %v3258_v3  ;;  %v1547_v3 = vmul.f32 %v1539_v55, %v3665_v39  ;;  %v3666_v13 = vld [vmem:[#allocation6_spill] sm:$0xff] }
 0x3d5   :  { %v1872_v33 = vpop.f32.mrf.mxu1  ;;  %v1913_v7 = vpop.f32.mrf.mxu0 }
 0x3d6   :  { %v1671_v33 = vmul.f32 %v1662_v21, %v3243_v56  ;;  %v1670_v7 = vmul.f32 %v1623_v24, %v3264_v11  ;;  %v1791_v56 = vmul.f32 %v1744_v41, %v3276_v19  ;;  %v1793_v11 = vmul.f32 %v1785_v45, %v3666_v13 }
 0x3d7   :  { %v1976_v4 = vpop.f32.mrf.mxu1  ;;  %v2017_v5 = vpop.f32.mrf.mxu0 }
 0x3d9   :  { %v1978_v36 = vpop.f32.mrf.mxu1  ;;  %v2019_v30 = vpop.f32.mrf.mxu0 }
 0x3db   :  { %v1980_v61 = vpop.f32.mrf.mxu1  ;;  %v2021_v49 = vpop.f32.mrf.mxu0 }
 0x3dc   :  { %v1672_v61 = vmul.f32 %v1664_v50, %v3249_v60  ;;  %v1675_v50 = vadd.f32 %v1671_v33, %v1546_v1 }
 0x3dd   :  { %v1981_v26 = vpop.f32.mrf.mxu1  ;;  %v2022_v22 = vpop.f32.mrf.mxu0 }
 0x3de   :  { %v1544_v22 = vmul.f32 %v1496_v57, %v3235_v52  ;;  %v1915_v52 = vmul.f32 %v1867_v17, %v3279_v28  ;;  %v1674_v57 = vadd.f32 %v1670_v7, %v1545_v40  ;;  %v1676_v62 = vadd.f32 %v1672_v61, %v1547_v3  ;;  %v3667_v3 = vld [vmem:[#allocation10_spill] sm:$0xff] }
 0x3df   :  { %v2097_v25 = vpop.f32.mrf.mxu1  ;;  %v2138_v14 = vpop.f32.mrf.mxu0 }
 0x3e0   :  { %v1673_v24 = vadd.f32 %v1669_v47, %v1544_v22  ;;  %v1797_v41 = vadd.f32 %v1793_v11, %v1676_v62  ;;  %v2145_v28 = vmul.f32 %v2097_v25, %v3306_v23  ;;  %v2147_v16 = vmul.f32 %v2138_v14, %v3285_v32 }
 0x3e1   :  { %v2099_v44 = vpop.f32.mrf.mxu1  ;;  %v2140_v6 = vpop.f32.mrf.mxu0 }
 0x3e2   :  { %v1922_v17 = vadd.f32 %v1918_v53, %v1797_v41  ;;  %v2148_v18 = vmul.f32 %v2140_v6, %v3300_v48  ;;  %v2534_v53 = vpop.permute.xlu1 %2533 }
 0x3e3   :  { %v2101_v37 = vpop.f32.mrf.mxu1  ;;  %v2142_v43 = vpop.f32.mrf.mxu0 }
 0x3e4   :  { %v3663_v37 = vld [vmem:[#allocation7_spill] sm:$0xff] }
 0x3e5   :  { %v2102_v38 = vpop.f32.mrf.mxu1  ;;  %v2143_v58 = vpop.f32.mrf.mxu0  ;;  %v1790_v43 = vmul.f32 %v1742_v2, %v3663_v37  ;;  %v1916_v2 = vmul.f32 %v1869_v59, %v3282_v31  ;;  %v2146_v31 = vmul.f32 %v2099_v44, %v3322_v0 }
 0x3e6   :  { %v3664_v38 = vld [vmem:[#allocation5_spill] sm:$0xff] }
 0x3e7   :  { %v2218_v29 = vpop.f32.mrf.mxu1  ;;  %v2259_v27 = vpop.f32.mrf.mxu0  ;;  %v1792_v58 = vmul.f32 %v1783_v54, %v3664_v38  ;;  %v1794_v55 = vadd.f32 %v1790_v43, %v1673_v24  ;;  %v1795_v54 = vadd.f32 %v1791_v56, %v1674_v57  ;;  %v2027_v43 = vadd.f32 %v2019_v30, %v1922_v17  ;;  %v3668_v56 = vld [vmem:[#allocation9_spill] sm:$0xff] }
 0x3e8   :  { %v2266_v7 = vmul.f32 %v2218_v29, %v3338_v12  ;;  %v2268_v61 = vmul.f32 %v2259_v27, %v3303_v51 }
 0x3e9   :  { %v2220_v49 = vpop.f32.mrf.mxu1  ;;  %v2261_v26 = vpop.f32.mrf.mxu0  ;;  %v1796_v19 = vadd.f32 %v1792_v58, %v1675_v50  ;;  %v1919_v47 = vadd.f32 %v1915_v52, %v1794_v55  ;;  %v1920_v40 = vadd.f32 %v1916_v2, %v1795_v54  ;;  %v3669_v50 = vld [vmem:[#allocation11_spill] sm:$0xff] }
 0x3ea   :  { %v2267_v23 = vmul.f32 %v2220_v49, %v3348_v46  ;;  %v2269_v32 = vmul.f32 %v2261_v26, %v3313_v9 }
 0x3eb   :  { %v2222_v21 = vpop.f32.mrf.mxu1  ;;  %v2263_v60 = vpop.f32.mrf.mxu0  ;;  %v1921_v1 = vadd.f32 %v1917_v20, %v1796_v19  ;;  %v2024_v63 = vadd.f32 %v1976_v4, %v1919_v47  ;;  %v2025_v22 = vadd.f32 %v1978_v36, %v1920_v40  ;;  %v3670_v20 = vld [vmem:[#allocation8_spill] sm:$0xff] }
 0x3ec   :  { %v2524_v60 = vpop.permute.xlu0 %2523 }
 0x3ed   :  { %v2223_v34 = vpop.f32.mrf.mxu1  ;;  %v2264_v39 = vpop.f32.mrf.mxu0  ;;  %v2026_v33 = vadd.f32 %v2017_v5, %v1921_v1  ;;  %v2149_v38 = vadd.f32 %v2145_v28, %v2024_v63  ;;  %v2150_v4 = vadd.f32 %v2146_v31, %v2025_v22  ;;  %v2152_v5 = vadd.f32 %v2148_v18, %v2027_v43 }
 0x3ef   :  { %v2343_v45 = vpop.f32.mrf.mxu1  ;;  %v2384_v37 = vpop.f32.mrf.mxu0  ;;  %v2151_v0 = vadd.f32 %v2147_v16, %v2026_v33  ;;  %v2270_v6 = vadd.f32 %v2266_v7, %v2149_v38  ;;  %v2271_v29 = vadd.f32 %v2267_v23, %v2150_v4  ;;  %v2273_v9 = vadd.f32 %v2269_v32, %v2152_v5 }
 0x3f0   :  { %v2391_v48 = vmul.f32 %v2343_v45, %v3359_v8  ;;  %v2393_v44 = vmul.f32 %v2384_v37, %v3335_v42 }
 0x3f1   :  { %v2345_v10 = vpop.f32.mrf.mxu1  ;;  %v2386_v59 = vpop.f32.mrf.mxu0  ;;  %v2272_v46 = vadd.f32 %v2268_v61, %v2151_v0 }
 0x3f2   :  { %v2392_v12 = vmul.f32 %v2345_v10, %v3374_v35  ;;  %v2394_v51 = vmul.f32 %v2386_v59, %v3343_v15  ;;  %v2395_v26 = vadd.f32 %v2391_v48, %v2270_v6 }
 0x3f3   :  { %v2347_v25 = vpop.f32.mrf.mxu1  ;;  %v2388_v14 = vpop.f32.mrf.mxu0  ;;  %v2397_v58 = vadd.f32 %v2393_v44, %v2272_v46 }
 0x3f4   :  { %v2396_v13 = vadd.f32 %v2392_v12, %v2271_v29  ;;  %v2398_v11 = vadd.f32 %v2394_v51, %v2273_v9 }
 0x3f5   :  { %v2348_v36 = vpop.f32.mrf.mxu1  ;;  %v2389_v30 = vpop.f32.mrf.mxu0 }
 0x3f7   :  { %v2464_v27 = vpop.f32.mrf.mxu1  ;;  %v2505_v49 = vpop.f32.mrf.mxu0 }
 0x3f8   :  { %v2512_v8 = vmul.f32 %v3667_v3, %v2464_v27  ;;  %v2514_v42 = vmul.f32 %v3668_v56, %v2505_v49 }
 0x3f9   :  { %v2466_v21 = vpop.f32.mrf.mxu1  ;;  %v2507_v35 = vpop.f32.mrf.mxu0 }
 0x3fa   :  { %v2516_v15 = vadd.f32 %v2512_v8, %v2395_v26  ;;  %v2518_v24 = vadd.f32 %v2514_v42, %v2397_v58  ;;  %v2513_v52 = vmul.f32 %v3669_v50, %v2466_v21  ;;  %v2515_v57 = vmul.f32 %v3670_v20, %v2507_v35 }
 0x3fb   :  { %v2468_v62 = vpop.f32.mrf.mxu1  ;;  %v2509_v2 = vpop.f32.mrf.mxu0 }
 0x3fc   :  { %v2526_v34 = vmul.f32 %v2524_v60, %v2516_v15  ;;  %v2528_v39 = vmul.f32 %v2524_v60, %v2518_v24  ;;  %v2517_v55 = vadd.f32 %v2513_v52, %v2396_v13  ;;  %v2519_v19 = vadd.f32 %v2515_v57, %v2398_v11 }
 0x3fd   :  { %v2469_v54 = vpop.f32.mrf.mxu1  ;;  %v2510_v41 = vpop.f32.mrf.mxu0 }
 0x3fe   :  { %v2536_v45 = vadd.f32 %v2534_v53, %v2526_v34  ;;  %v2538_v37 = vadd.f32 %v2534_v53, %v2528_v39  ;;  %v2527_v47 = vmul.f32 %v2524_v60, %v2517_v55  ;;  %v2529_v1 = vmul.f32 %v2524_v60, %v2519_v19 }
 0x400   :  { %v2537_v28 = vadd.f32 %v2534_v53, %v2527_v47  ;;  %v2539_v16 = vadd.f32 %v2534_v53, %v2529_v1  ;;  %v2540_v40 = vmax.f32 %v2536_v45, 0.0  ;;  %v2542_v17 = vmax.f32 %v2538_v37, 0.0 }
 0x402   :  { %v2541_v31 = vmax.f32 %v2537_v28, 0.0  ;;  %v2543_v18 = vmax.f32 %v2539_v16, 0.0 }
 0x404   :  { %v2546_v10 = vcombine.low %v2540_v40, %v2541_v31  ;;  %v2551_v59 = vcombine.low %v2542_v17, %v2543_v18 }
 0x406   :  { %2548 = vst [vmem:[%s3640_s10] sm:$0xff] %v2546_v10  ;;  %2653 = vst [vmem:[%s3640_s10 + $0x8] sm:$0xff] %v2551_v59 }

</bundles_post_ra>
